<compile_context>
chip_gen: v7x
topology: tpu7x:2x2x1
jax: 0.10.0
libtpu: 0.0.40
codegen_flags: <defaults>
</compile_context>

<pallas_src>
import functools

import jax
import jax.numpy as jnp
from jax import lax
from jax.experimental import pallas as pl
from jax.experimental.pallas import tpu as pltpu


def _vmem_limit_bytes():
    """~25% headroom below physical VMEM; safe fallback for v7x (64 MiB/TC)."""
    try:
        cap = pltpu.get_tpu_info().vmem_capacity_bytes
        return int(cap * 0.75)
    except Exception:  # pragma: no cover - conservative fallback
        return 48 * 1024 * 1024


# ---------------------------------------------------------------------------
# Fused kernel: time-parallel input projection + serial recurrence.
# Single invocation (no grid); all operands whole-array resident in VMEM.
# ---------------------------------------------------------------------------
def _fused_lstm_kernel(x2d_ref, wih_ref, bias_ref, whh_ref, h0_ref, c0_ref,
                       h_out_ref, c_out_ref, xp_ref):
    """
    x2d_ref : (T*B, D)   bf16   time-major inputs, flattened over time
    wih_ref : (D, 4H)    bf16   W_ih^T
    bias_ref: (1, 4H)    f32    b_ih + b_hh (pre-summed in the wrapper)
    whh_ref : (H, 4H)    bf16   W_hh^T
    h0/c0   : (B, H)     f32
    xp_ref  : (T*B, 4H)  f32    VMEM scratch for the hoisted projection
    """
    TB = x2d_ref.shape[0]
    B, H = h0_ref.shape
    T = TB // B

    # 1) Time-parallel projection: ONE big MXU matmul (M = T*B) with fused
    #    bias, kept in VMEM (no HBM writeback).  bf16 operands, f32 accum.
    xp_ref[...] = (
        jnp.dot(x2d_ref[...], wih_ref[...], preferred_element_type=jnp.float32)
        + bias_ref[...]
    )

    # 2) Serial recurrence: per step a single (B, H) @ (H, 4H) MXU push plus
    #    VPU/EUP gate math.  W_hh is loaded from VMEM once.
    # TODO(synk): hold W_hh in the MXU weight registers across timesteps
    # (pltpu.matmul_push_rhs once, then matmul_acc_lhs/matmul_pop per step) to
    # avoid re-pushing the (H, 4H) RHS every step; at B=8 the per-step M is
    # tiny so the weight load dominates the serial matmul cost.
    w_hh = whh_ref[...]

    def step(t, carry):
        h, c = carry
        off = pl.multiple_of(t * B, B)  # sublane-aligned dynamic row offset
        gates = xp_ref[pl.ds(off, B), :] + jnp.dot(
            h.astype(w_hh.dtype), w_hh, preferred_element_type=jnp.float32)
        i_g = jax.nn.sigmoid(gates[:, 0 * H:1 * H])
        f_g = jax.nn.sigmoid(gates[:, 1 * H:2 * H])
        g_g = jnp.tanh(gates[:, 2 * H:3 * H])
        o_g = jax.nn.sigmoid(gates[:, 3 * H:4 * H])
        c_new = f_g * c + i_g * g_g
        h_new = o_g * jnp.tanh(c_new)
        return h_new, c_new

    init = (h0_ref[...], c0_ref[...])  # f32 carries
    if T <= 8:
        # Short sequences: full static unroll.
        h_fin, c_fin = init
        for t in range(T):
            h_fin, c_fin = step(t, (h_fin, c_fin))
    else:
        # Partial unroll: cross-step scheduler visibility (overlap step t+1's
        # MXU push with step t's EUP/VPU gate math) without vreg blowup.
        h_fin, c_fin = lax.fori_loop(0, T, step, init, unroll=8)

    h_out_ref[...] = h_fin.astype(h_out_ref.dtype)
    c_out_ref[...] = c_fin.astype(c_out_ref.dtype)


# ---------------------------------------------------------------------------
# Wrapper matching LSTM.forward: returns (out, (h, c)) with out == last h.
# ---------------------------------------------------------------------------
@functools.partial(jax.jit, static_argnames=("batch_first",))
def lstm_forward(x, state, params, batch_first=False):
    if batch_first:
        x = jnp.transpose(x, (1, 0, 2))  # -> (T, B, D)
    h0, c0 = state
    w_ih_t, b_ih, w_hh_t, b_hh = params  # (D,4H), (1,4H), (H,4H), (1,4H)

    T, B, D = x.shape
    H = h0.shape[-1]
    G = 4 * H

    if T == 0:  # empty sequence: state unchanged (guard; shapes are static)
        return h0, (h0, c0)

    # bf16 MXU operands (f32 accumulation happens inside the kernel).
    x2d = x.reshape(T * B, D).astype(jnp.bfloat16)
    w_ih_bf = w_ih_t.astype(jnp.bfloat16)
    w_hh_bf = w_hh_t.astype(jnp.bfloat16)
    bias = (b_ih + b_hh).astype(jnp.float32)
    h0f = h0.astype(jnp.float32)
    c0f = c0.astype(jnp.float32)

    # TODO(synk): for long sequences (T*B*4H*4 bytes approaching the VMEM cap)
    # block the time axis and stream x / x_proj chunks with pltpu.emit_pipeline
    # instead of whole-sequence VMEM residency.
    # TODO(synk): on v7x with B >= 16, split the batch across the two
    # TensorCores (grid=(2,), core-parallel) — batch rows are independent.
    cost = pl.CostEstimate(
        flops=2 * T * B * D * G + 2 * T * B * H * G + 10 * T * B * H,
        transcendentals=5 * T * B * H,
        bytes_accessed=2 * (T * B * D + D * G + H * G) + 4 * (G + 4 * B * H),
    )
    vmem = pl.BlockSpec(memory_space=pltpu.MemorySpace.VMEM)
    h_fin, c_fin = pl.pallas_call(
        _fused_lstm_kernel,
        out_shape=(
            jax.ShapeDtypeStruct((B, H), x.dtype),
            jax.ShapeDtypeStruct((B, H), x.dtype),
        ),
        in_specs=[vmem] * 6,
        out_specs=(vmem, vmem),
        scratch_shapes=[pltpu.VMEM((T * B, G), jnp.float32)],
        compiler_params=pltpu.CompilerParams(
            vmem_limit_bytes=_vmem_limit_bytes(),
        ),
        cost_estimate=cost,
    )(x2d, w_ih_bf, bias, w_hh_bf, h0f, c0f)

    # PyTorch module: out = output[-1] == last hy; state = (hy, cy)
    return h_fin, (h_fin, c_fin)


# ---------------------------------------------------------------------------
# Pure-JAX reference mirroring the PyTorch loop (for verification).
# ---------------------------------------------------------------------------
def _reference_lstm(x, state, params, batch_first=False):
    if batch_first:
        x = jnp.transpose(x, (1, 0, 2))
    w_ih_t, b_ih, w_hh_t, b_hh = params

    def step(carry, x_t):
        h, c = carry
        gates = x_t @ w_ih_t + b_ih + h @ w_hh_t + b_hh
        H = h.shape[-1]
        i = jax.nn.sigmoid(gates[:, 0 * H:1 * H])
        f = jax.nn.sigmoid(gates[:, 1 * H:2 * H])
        g = jnp.tanh(gates[:, 2 * H:3 * H])
        o = jax.nn.sigmoid(gates[:, 3 * H:4 * H])
        c_new = f * c + i * g
        h_new = o * jnp.tanh(c_new)
        return (h_new, c_new), h_new

    (h, c), _ = jax.lax.scan(step, state, x)
    return h, (h, c)


def init_params(key, input_size, hidden_size):
    """Deterministic init matching nn.Linear shapes: W (4H, in), b (4H,)."""
    k1, k2, k3, k4 = jax.random.split(key, 4)
    bound_ih = 1.0 / jnp.sqrt(input_size)
    bound_hh = 1.0 / jnp.sqrt(hidden_size)
    w_ih = jax.random.uniform(k1, (4 * hidden_size, input_size),
                              jnp.float32, -bound_ih, bound_ih)
    b_ih = jax.random.uniform(k2, (4 * hidden_size,),
                              jnp.float32, -bound_ih, bound_ih)
    w_hh = jax.random.uniform(k3, (4 * hidden_size, hidden_size),
                              jnp.float32, -bound_hh, bound_hh)
    b_hh = jax.random.uniform(k4, (4 * hidden_size,),
                              jnp.float32, -bound_hh, bound_hh)
    # Pre-transpose weights and make biases 2D for the kernels.
    return (w_ih.T, b_ih[None, :], w_hh.T, b_hh[None, :])


if __name__ == "__main__":
    # (8,128)-aligned small shapes: B multiple of 8, H multiple of 128.
    T, B = 8, 8
    input_size, hidden_size = 16, 128

    key = jax.random.PRNGKey(0)
    kx, kh, kc, kp = jax.random.split(key, 4)

    x = jax.random.normal(kx, (T, B, input_size), jnp.float32)   # time-major
    h0 = jax.random.normal(kh, (B, hidden_size), jnp.float32)
    c0 = jax.random.normal(kc, (B, hidden_size), jnp.float32)
    params = init_params(kp, input_size, hidden_size)

    out, (h, c) = lstm_forward(x, (h0, c0), params, batch_first=False)
    jax.block_until_ready((out, h, c))

    # Tolerance reflects the bf16-operand / f32-accumulation matmul path vs.
    # the pure-f32 reference (bounded gate nonlinearities keep drift small).
    out_ref, (h_ref, c_ref) = _reference_lstm(x, (h0, c0), params)
    assert jnp.allclose(out, out_ref, atol=2e-2, rtol=2e-2), \
        float(jnp.max(jnp.abs(out - out_ref)))
    assert jnp.allclose(h, h_ref, atol=2e-2, rtol=2e-2)
    assert jnp.allclose(c, c_ref, atol=2e-2, rtol=2e-2)

    print("KERNEL_OK")
</pallas_src>

<mosaic_0001>
module attributes {stable_mosaic.version = 11 : i64} {
  func.func @_fused_lstm_kernel(%arg0: memref<64x16xbf16, #tpu.memory_space<vmem>>, %arg1: memref<16x512xbf16, #tpu.memory_space<vmem>>, %arg2: memref<1x512xf32, #tpu.memory_space<vmem>>, %arg3: memref<128x512xbf16, #tpu.memory_space<vmem>>, %arg4: memref<8x128xf32, #tpu.memory_space<vmem>>, %arg5: memref<8x128xf32, #tpu.memory_space<vmem>>, %arg6: memref<8x128xf32, #tpu.memory_space<vmem>>, %arg7: memref<8x128xf32, #tpu.memory_space<vmem>>, %arg8: memref<64x512xf32, #tpu.memory_space<vmem>>) attributes {dimension_semantics = [], scalar_prefetch = 0 : i64, scratch_operands = 1 : i64, tpu.core_type = #tpu.core_type<tc>} {
    %c0 = arith.constant 0 : index
    %c0_0 = arith.constant 0 : index
    %0 = vector.load %arg0[%c0, %c0_0] : memref<64x16xbf16, #tpu.memory_space<vmem>>, vector<64x16xbf16>
    %c0_1 = arith.constant 0 : index
    %c0_2 = arith.constant 0 : index
    %1 = vector.load %arg1[%c0_1, %c0_2] : memref<16x512xbf16, #tpu.memory_space<vmem>>, vector<16x512xbf16>
    %cst = arith.constant dense<0.000000e+00> : vector<64x512xf32>
    %2 = tpu.matmul %0, %1, %cst {dimension_numbers = #tpu.dot_dimension_numbers<[1], [0], [0], [1], [0, 0, 1, 1], [], []>} : vector<64x16xbf16>, vector<16x512xbf16>, vector<64x512xf32> -> vector<64x512xf32>
    %c0_3 = arith.constant 0 : index
    %c0_4 = arith.constant 0 : index
    %3 = vector.load %arg2[%c0_3, %c0_4] : memref<1x512xf32, #tpu.memory_space<vmem>>, vector<1x512xf32>
    %4 = vector.broadcast %3 : vector<1x512xf32> to vector<64x512xf32>
    %5 = arith.addf %2, %4 : vector<64x512xf32>
    %c0_5 = arith.constant 0 : index
    %c0_6 = arith.constant 0 : index
    %6 = vector.load %arg8[%c0_5, %c0_6] : memref<64x512xf32, #tpu.memory_space<vmem>>, vector<64x512xf32>
    tpu.vector_store %arg8[%c0_5, %c0_6], %5 {strides = array<i32>} : memref<64x512xf32, #tpu.memory_space<vmem>>, vector<64x512xf32>,
    %c0_7 = arith.constant 0 : index
    %c0_8 = arith.constant 0 : index
    %7 = vector.load %arg3[%c0_7, %c0_8] : memref<128x512xbf16, #tpu.memory_space<vmem>>, vector<128x512xbf16>
    %c0_9 = arith.constant 0 : index
    %c0_10 = arith.constant 0 : index
    %8 = vector.load %arg4[%c0_9, %c0_10] : memref<8x128xf32, #tpu.memory_space<vmem>>, vector<8x128xf32>
    %c0_11 = arith.constant 0 : index
    %c0_12 = arith.constant 0 : index
    %9 = vector.load %arg5[%c0_11, %c0_12] : memref<8x128xf32, #tpu.memory_space<vmem>>, vector<8x128xf32>
    %c0_i32 = arith.constant 0 : i32
    %10 = tpu.assume_multiple %c0_i32, 8 : i32
    %11 = arith.index_cast %10 : i32 to index
    %c0_13 = arith.constant 0 : index
    %12 = vector.load %arg8[%11, %c0_13] : memref<64x512xf32, #tpu.memory_space<vmem>>, vector<8x512xf32>
    %13 = arith.truncf %8 : vector<8x128xf32> to vector<8x128xbf16>
    %cst_14 = arith.constant dense<0.000000e+00> : vector<8x512xf32>
    %14 = tpu.matmul %13, %7, %cst_14 {dimension_numbers = #tpu.dot_dimension_numbers<[1], [0], [0], [1], [0, 0, 1, 1], [], []>} : vector<8x128xbf16>, vector<128x512xbf16>, vector<8x512xf32> -> vector<8x512xf32>
    %15 = arith.addf %12, %14 : vector<8x512xf32>
    %16 = vector.extract_strided_slice %15 {offsets = [0, 0], sizes = [8, 128], strides = [1, 1]} : vector<8x512xf32> to vector<8x128xf32>
    %17 = arith.negf %16 : vector<8x128xf32>
    %18 = math.exp %17 : vector<8x128xf32>
    %cst_15 = arith.constant 1.000000e+00 : f32
    %19 = vector.broadcast %cst_15 : f32 to vector<8x128xf32>
    %20 = arith.addf %19, %18 : vector<8x128xf32>
    %21 = arith.divf %19, %20 : vector<8x128xf32>
    %22 = vector.extract_strided_slice %15 {offsets = [0, 128], sizes = [8, 128], strides = [1, 1]} : vector<8x512xf32> to vector<8x128xf32>
    %23 = arith.negf %22 : vector<8x128xf32>
    %24 = math.exp %23 : vector<8x128xf32>
    %cst_16 = arith.constant 1.000000e+00 : f32
    %25 = vector.broadcast %cst_16 : f32 to vector<8x128xf32>
    %26 = arith.addf %25, %24 : vector<8x128xf32>
    %27 = arith.divf %25, %26 : vector<8x128xf32>
    %28 = vector.extract_strided_slice %15 {offsets = [0, 256], sizes = [8, 128], strides = [1, 1]} : vector<8x512xf32> to vector<8x128xf32>
    %29 = math.tanh %28 : vector<8x128xf32>
    %30 = vector.extract_strided_slice %15 {offsets = [0, 384], sizes = [8, 128], strides = [1, 1]} : vector<8x512xf32> to vector<8x128xf32>
    %31 = arith.negf %30 : vector<8x128xf32>
    %32 = math.exp %31 : vector<8x128xf32>
    %cst_17 = arith.constant 1.000000e+00 : f32
    %33 = vector.broadcast %cst_17 : f32 to vector<8x128xf32>
    %34 = arith.addf %33, %32 : vector<8x128xf32>
    %35 = arith.divf %33, %34 : vector<8x128xf32>
    %36 = arith.mulf %27, %9 : vector<8x128xf32>
    %37 = arith.mulf %21, %29 : vector<8x128xf32>
    %38 = arith.addf %36, %37 : vector<8x128xf32>
    %39 = math.tanh %38 : vector<8x128xf32>
    %40 = arith.mulf %35, %39 : vector<8x128xf32>
    %c8_i32 = arith.constant 8 : i32
    %41 = tpu.assume_multiple %c8_i32, 8 : i32
    %42 = arith.index_cast %41 : i32 to index
    %c0_18 = arith.constant 0 : index
    %43 = vector.load %arg8[%42, %c0_18] : memref<64x512xf32, #tpu.memory_space<vmem>>, vector<8x512xf32>
    %44 = arith.truncf %40 : vector<8x128xf32> to vector<8x128xbf16>
    %cst_19 = arith.constant dense<0.000000e+00> : vector<8x512xf32>
    %45 = tpu.matmul %44, %7, %cst_19 {dimension_numbers = #tpu.dot_dimension_numbers<[1], [0], [0], [1], [0, 0, 1, 1], [], []>} : vector<8x128xbf16>, vector<128x512xbf16>, vector<8x512xf32> -> vector<8x512xf32>
    %46 = arith.addf %43, %45 : vector<8x512xf32>
    %47 = vector.extract_strided_slice %46 {offsets = [0, 0], sizes = [8, 128], strides = [1, 1]} : vector<8x512xf32> to vector<8x128xf32>
    %48 = arith.negf %47 : vector<8x128xf32>
    %49 = math.exp %48 : vector<8x128xf32>
    %cst_20 = arith.constant 1.000000e+00 : f32
    %50 = vector.broadcast %cst_20 : f32 to vector<8x128xf32>
    %51 = arith.addf %50, %49 : vector<8x128xf32>
    %52 = arith.divf %50, %51 : vector<8x128xf32>
    %53 = vector.extract_strided_slice %46 {offsets = [0, 128], sizes = [8, 128], strides = [1, 1]} : vector<8x512xf32> to vector<8x128xf32>
    %54 = arith.negf %53 : vector<8x128xf32>
    %55 = math.exp %54 : vector<8x128xf32>
    %cst_21 = arith.constant 1.000000e+00 : f32
    %56 = vector.broadcast %cst_21 : f32 to vector<8x128xf32>
    %57 = arith.addf %56, %55 : vector<8x128xf32>
    %58 = arith.divf %56, %57 : vector<8x128xf32>
    %59 = vector.extract_strided_slice %46 {offsets = [0, 256], sizes = [8, 128], strides = [1, 1]} : vector<8x512xf32> to vector<8x128xf32>
    %60 = math.tanh %59 : vector<8x128xf32>
    %61 = vector.extract_strided_slice %46 {offsets = [0, 384], sizes = [8, 128], strides = [1, 1]} : vector<8x512xf32> to vector<8x128xf32>
    %62 = arith.negf %61 : vector<8x128xf32>
    %63 = math.exp %62 : vector<8x128xf32>
    %cst_22 = arith.constant 1.000000e+00 : f32
    %64 = vector.broadcast %cst_22 : f32 to vector<8x128xf32>
    %65 = arith.addf %64, %63 : vector<8x128xf32>
    %66 = arith.divf %64, %65 : vector<8x128xf32>
    %67 = arith.mulf %58, %38 : vector<8x128xf32>
    %68 = arith.mulf %52, %60 : vector<8x128xf32>
    %69 = arith.addf %67, %68 : vector<8x128xf32>
    %70 = math.tanh %69 : vector<8x128xf32>
    %71 = arith.mulf %66, %70 : vector<8x128xf32>
    %c16_i32 = arith.constant 16 : i32
    %72 = tpu.assume_multiple %c16_i32, 8 : i32
    %73 = arith.index_cast %72 : i32 to index
    %c0_23 = arith.constant 0 : index
    %74 = vector.load %arg8[%73, %c0_23] : memref<64x512xf32, #tpu.memory_space<vmem>>, vector<8x512xf32>
    %75 = arith.truncf %71 : vector<8x128xf32> to vector<8x128xbf16>
    %cst_24 = arith.constant dense<0.000000e+00> : vector<8x512xf32>
    %76 = tpu.matmul %75, %7, %cst_24 {dimension_numbers = #tpu.dot_dimension_numbers<[1], [0], [0], [1], [0, 0, 1, 1], [], []>} : vector<8x128xbf16>, vector<128x512xbf16>, vector<8x512xf32> -> vector<8x512xf32>
    %77 = arith.addf %74, %76 : vector<8x512xf32>
    %78 = vector.extract_strided_slice %77 {offsets = [0, 0], sizes = [8, 128], strides = [1, 1]} : vector<8x512xf32> to vector<8x128xf32>
    %79 = arith.negf %78 : vector<8x128xf32>
    %80 = math.exp %79 : vector<8x128xf32>
    %cst_25 = arith.constant 1.000000e+00 : f32
    %81 = vector.broadcast %cst_25 : f32 to vector<8x128xf32>
    %82 = arith.addf %81, %80 : vector<8x128xf32>
    %83 = arith.divf %81, %82 : vector<8x128xf32>
    %84 = vector.extract_strided_slice %77 {offsets = [0, 128], sizes = [8, 128], strides = [1, 1]} : vector<8x512xf32> to vector<8x128xf32>
    %85 = arith.negf %84 : vector<8x128xf32>
    %86 = math.exp %85 : vector<8x128xf32>
    %cst_26 = arith.constant 1.000000e+00 : f32
    %87 = vector.broadcast %cst_26 : f32 to vector<8x128xf32>
    %88 = arith.addf %87, %86 : vector<8x128xf32>
    %89 = arith.divf %87, %88 : vector<8x128xf32>
    %90 = vector.extract_strided_slice %77 {offsets = [0, 256], sizes = [8, 128], strides = [1, 1]} : vector<8x512xf32> to vector<8x128xf32>
    %91 = math.tanh %90 : vector<8x128xf32>
    %92 = vector.extract_strided_slice %77 {offsets = [0, 384], sizes = [8, 128], strides = [1, 1]} : vector<8x512xf32> to vector<8x128xf32>
    %93 = arith.negf %92 : vector<8x128xf32>
    %94 = math.exp %93 : vector<8x128xf32>
    %cst_27 = arith.constant 1.000000e+00 : f32
    %95 = vector.broadcast %cst_27 : f32 to vector<8x128xf32>
    %96 = arith.addf %95, %94 : vector<8x128xf32>
    %97 = arith.divf %95, %96 : vector<8x128xf32>
    %98 = arith.mulf %89, %69 : vector<8x128xf32>
    %99 = arith.mulf %83, %91 : vector<8x128xf32>
    %100 = arith.addf %98, %99 : vector<8x128xf32>
    %101 = math.tanh %100 : vector<8x128xf32>
    %102 = arith.mulf %97, %101 : vector<8x128xf32>
    %c24_i32 = arith.constant 24 : i32
    %103 = tpu.assume_multiple %c24_i32, 8 : i32
    %104 = arith.index_cast %103 : i32 to index
    %c0_28 = arith.constant 0 : index
    %105 = vector.load %arg8[%104, %c0_28] : memref<64x512xf32, #tpu.memory_space<vmem>>, vector<8x512xf32>
    %106 = arith.truncf %102 : vector<8x128xf32> to vector<8x128xbf16>
    %cst_29 = arith.constant dense<0.000000e+00> : vector<8x512xf32>
    %107 = tpu.matmul %106, %7, %cst_29 {dimension_numbers = #tpu.dot_dimension_numbers<[1], [0], [0], [1], [0, 0, 1, 1], [], []>} : vector<8x128xbf16>, vector<128x512xbf16>, vector<8x512xf32> -> vector<8x512xf32>
    %108 = arith.addf %105, %107 : vector<8x512xf32>
    %109 = vector.extract_strided_slice %108 {offsets = [0, 0], sizes = [8, 128], strides = [1, 1]} : vector<8x512xf32> to vector<8x128xf32>
    %110 = arith.negf %109 : vector<8x128xf32>
    %111 = math.exp %110 : vector<8x128xf32>
    %cst_30 = arith.constant 1.000000e+00 : f32
    %112 = vector.broadcast %cst_30 : f32 to vector<8x128xf32>
    %113 = arith.addf %112, %111 : vector<8x128xf32>
    %114 = arith.divf %112, %113 : vector<8x128xf32>
    %115 = vector.extract_strided_slice %108 {offsets = [0, 128], sizes = [8, 128], strides = [1, 1]} : vector<8x512xf32> to vector<8x128xf32>
    %116 = arith.negf %115 : vector<8x128xf32>
    %117 = math.exp %116 : vector<8x128xf32>
    %cst_31 = arith.constant 1.000000e+00 : f32
    %118 = vector.broadcast %cst_31 : f32 to vector<8x128xf32>
    %119 = arith.addf %118, %117 : vector<8x128xf32>
    %120 = arith.divf %118, %119 : vector<8x128xf32>
    %121 = vector.extract_strided_slice %108 {offsets = [0, 256], sizes = [8, 128], strides = [1, 1]} : vector<8x512xf32> to vector<8x128xf32>
    %122 = math.tanh %121 : vector<8x128xf32>
    %123 = vector.extract_strided_slice %108 {offsets = [0, 384], sizes = [8, 128], strides = [1, 1]} : vector<8x512xf32> to vector<8x128xf32>
    %124 = arith.negf %123 : vector<8x128xf32>
    %125 = math.exp %124 : vector<8x128xf32>
    %cst_32 = arith.constant 1.000000e+00 : f32
    %126 = vector.broadcast %cst_32 : f32 to vector<8x128xf32>
    %127 = arith.addf %126, %125 : vector<8x128xf32>
    %128 = arith.divf %126, %127 : vector<8x128xf32>
    %129 = arith.mulf %120, %100 : vector<8x128xf32>
    %130 = arith.mulf %114, %122 : vector<8x128xf32>
    %131 = arith.addf %129, %130 : vector<8x128xf32>
    %132 = math.tanh %131 : vector<8x128xf32>
    %133 = arith.mulf %128, %132 : vector<8x128xf32>
    %c32_i32 = arith.constant 32 : i32
    %134 = tpu.assume_multiple %c32_i32, 8 : i32
    %135 = arith.index_cast %134 : i32 to index
    %c0_33 = arith.constant 0 : index
    %136 = vector.load %arg8[%135, %c0_33] : memref<64x512xf32, #tpu.memory_space<vmem>>, vector<8x512xf32>
    %137 = arith.truncf %133 : vector<8x128xf32> to vector<8x128xbf16>
    %cst_34 = arith.constant dense<0.000000e+00> : vector<8x512xf32>
    %138 = tpu.matmul %137, %7, %cst_34 {dimension_numbers = #tpu.dot_dimension_numbers<[1], [0], [0], [1], [0, 0, 1, 1], [], []>} : vector<8x128xbf16>, vector<128x512xbf16>, vector<8x512xf32> -> vector<8x512xf32>
    %139 = arith.addf %136, %138 : vector<8x512xf32>
    %140 = vector.extract_strided_slice %139 {offsets = [0, 0], sizes = [8, 128], strides = [1, 1]} : vector<8x512xf32> to vector<8x128xf32>
    %141 = arith.negf %140 : vector<8x128xf32>
    %142 = math.exp %141 : vector<8x128xf32>
    %cst_35 = arith.constant 1.000000e+00 : f32
    %143 = vector.broadcast %cst_35 : f32 to vector<8x128xf32>
    %144 = arith.addf %143, %142 : vector<8x128xf32>
    %145 = arith.divf %143, %144 : vector<8x128xf32>
    %146 = vector.extract_strided_slice %139 {offsets = [0, 128], sizes = [8, 128], strides = [1, 1]} : vector<8x512xf32> to vector<8x128xf32>
    %147 = arith.negf %146 : vector<8x128xf32>
    %148 = math.exp %147 : vector<8x128xf32>
    %cst_36 = arith.constant 1.000000e+00 : f32
    %149 = vector.broadcast %cst_36 : f32 to vector<8x128xf32>
    %150 = arith.addf %149, %148 : vector<8x128xf32>
    %151 = arith.divf %149, %150 : vector<8x128xf32>
    %152 = vector.extract_strided_slice %139 {offsets = [0, 256], sizes = [8, 128], strides = [1, 1]} : vector<8x512xf32> to vector<8x128xf32>
    %153 = math.tanh %152 : vector<8x128xf32>
    %154 = vector.extract_strided_slice %139 {offsets = [0, 384], sizes = [8, 128], strides = [1, 1]} : vector<8x512xf32> to vector<8x128xf32>
    %155 = arith.negf %154 : vector<8x128xf32>
    %156 = math.exp %155 : vector<8x128xf32>
    %cst_37 = arith.constant 1.000000e+00 : f32
    %157 = vector.broadcast %cst_37 : f32 to vector<8x128xf32>
    %158 = arith.addf %157, %156 : vector<8x128xf32>
    %159 = arith.divf %157, %158 : vector<8x128xf32>
    %160 = arith.mulf %151, %131 : vector<8x128xf32>
    %161 = arith.mulf %145, %153 : vector<8x128xf32>
    %162 = arith.addf %160, %161 : vector<8x128xf32>
    %163 = math.tanh %162 : vector<8x128xf32>
    %164 = arith.mulf %159, %163 : vector<8x128xf32>
    %c40_i32 = arith.constant 40 : i32
    %165 = tpu.assume_multiple %c40_i32, 8 : i32
    %166 = arith.index_cast %165 : i32 to index
    %c0_38 = arith.constant 0 : index
    %167 = vector.load %arg8[%166, %c0_38] : memref<64x512xf32, #tpu.memory_space<vmem>>, vector<8x512xf32>
    %168 = arith.truncf %164 : vector<8x128xf32> to vector<8x128xbf16>
    %cst_39 = arith.constant dense<0.000000e+00> : vector<8x512xf32>
    %169 = tpu.matmul %168, %7, %cst_39 {dimension_numbers = #tpu.dot_dimension_numbers<[1], [0], [0], [1], [0, 0, 1, 1], [], []>} : vector<8x128xbf16>, vector<128x512xbf16>, vector<8x512xf32> -> vector<8x512xf32>
    %170 = arith.addf %167, %169 : vector<8x512xf32>
    %171 = vector.extract_strided_slice %170 {offsets = [0, 0], sizes = [8, 128], strides = [1, 1]} : vector<8x512xf32> to vector<8x128xf32>
    %172 = arith.negf %171 : vector<8x128xf32>
    %173 = math.exp %172 : vector<8x128xf32>
    %cst_40 = arith.constant 1.000000e+00 : f32
    %174 = vector.broadcast %cst_40 : f32 to vector<8x128xf32>
    %175 = arith.addf %174, %173 : vector<8x128xf32>
    %176 = arith.divf %174, %175 : vector<8x128xf32>
    %177 = vector.extract_strided_slice %170 {offsets = [0, 128], sizes = [8, 128], strides = [1, 1]} : vector<8x512xf32> to vector<8x128xf32>
    %178 = arith.negf %177 : vector<8x128xf32>
    %179 = math.exp %178 : vector<8x128xf32>
    %cst_41 = arith.constant 1.000000e+00 : f32
    %180 = vector.broadcast %cst_41 : f32 to vector<8x128xf32>
    %181 = arith.addf %180, %179 : vector<8x128xf32>
    %182 = arith.divf %180, %181 : vector<8x128xf32>
    %183 = vector.extract_strided_slice %170 {offsets = [0, 256], sizes = [8, 128], strides = [1, 1]} : vector<8x512xf32> to vector<8x128xf32>
    %184 = math.tanh %183 : vector<8x128xf32>
    %185 = vector.extract_strided_slice %170 {offsets = [0, 384], sizes = [8, 128], strides = [1, 1]} : vector<8x512xf32> to vector<8x128xf32>
    %186 = arith.negf %185 : vector<8x128xf32>
    %187 = math.exp %186 : vector<8x128xf32>
    %cst_42 = arith.constant 1.000000e+00 : f32
    %188 = vector.broadcast %cst_42 : f32 to vector<8x128xf32>
    %189 = arith.addf %188, %187 : vector<8x128xf32>
    %190 = arith.divf %188, %189 : vector<8x128xf32>
    %191 = arith.mulf %182, %162 : vector<8x128xf32>
    %192 = arith.mulf %176, %184 : vector<8x128xf32>
    %193 = arith.addf %191, %192 : vector<8x128xf32>
    %194 = math.tanh %193 : vector<8x128xf32>
    %195 = arith.mulf %190, %194 : vector<8x128xf32>
    %c48_i32 = arith.constant 48 : i32
    %196 = tpu.assume_multiple %c48_i32, 8 : i32
    %197 = arith.index_cast %196 : i32 to index
    %c0_43 = arith.constant 0 : index
    %198 = vector.load %arg8[%197, %c0_43] : memref<64x512xf32, #tpu.memory_space<vmem>>, vector<8x512xf32>
    %199 = arith.truncf %195 : vector<8x128xf32> to vector<8x128xbf16>
    %cst_44 = arith.constant dense<0.000000e+00> : vector<8x512xf32>
    %200 = tpu.matmul %199, %7, %cst_44 {dimension_numbers = #tpu.dot_dimension_numbers<[1], [0], [0], [1], [0, 0, 1, 1], [], []>} : vector<8x128xbf16>, vector<128x512xbf16>, vector<8x512xf32> -> vector<8x512xf32>
    %201 = arith.addf %198, %200 : vector<8x512xf32>
    %202 = vector.extract_strided_slice %201 {offsets = [0, 0], sizes = [8, 128], strides = [1, 1]} : vector<8x512xf32> to vector<8x128xf32>
    %203 = arith.negf %202 : vector<8x128xf32>
    %204 = math.exp %203 : vector<8x128xf32>
    %cst_45 = arith.constant 1.000000e+00 : f32
    %205 = vector.broadcast %cst_45 : f32 to vector<8x128xf32>
    %206 = arith.addf %205, %204 : vector<8x128xf32>
    %207 = arith.divf %205, %206 : vector<8x128xf32>
    %208 = vector.extract_strided_slice %201 {offsets = [0, 128], sizes = [8, 128], strides = [1, 1]} : vector<8x512xf32> to vector<8x128xf32>
    %209 = arith.negf %208 : vector<8x128xf32>
    %210 = math.exp %209 : vector<8x128xf32>
    %cst_46 = arith.constant 1.000000e+00 : f32
    %211 = vector.broadcast %cst_46 : f32 to vector<8x128xf32>
    %212 = arith.addf %211, %210 : vector<8x128xf32>
    %213 = arith.divf %211, %212 : vector<8x128xf32>
    %214 = vector.extract_strided_slice %201 {offsets = [0, 256], sizes = [8, 128], strides = [1, 1]} : vector<8x512xf32> to vector<8x128xf32>
    %215 = math.tanh %214 : vector<8x128xf32>
    %216 = vector.extract_strided_slice %201 {offsets = [0, 384], sizes = [8, 128], strides = [1, 1]} : vector<8x512xf32> to vector<8x128xf32>
    %217 = arith.negf %216 : vector<8x128xf32>
    %218 = math.exp %217 : vector<8x128xf32>
    %cst_47 = arith.constant 1.000000e+00 : f32
    %219 = vector.broadcast %cst_47 : f32 to vector<8x128xf32>
    %220 = arith.addf %219, %218 : vector<8x128xf32>
    %221 = arith.divf %219, %220 : vector<8x128xf32>
    %222 = arith.mulf %213, %193 : vector<8x128xf32>
    %223 = arith.mulf %207, %215 : vector<8x128xf32>
    %224 = arith.addf %222, %223 : vector<8x128xf32>
    %225 = math.tanh %224 : vector<8x128xf32>
    %226 = arith.mulf %221, %225 : vector<8x128xf32>
    %c56_i32 = arith.constant 56 : i32
    %227 = tpu.assume_multiple %c56_i32, 8 : i32
    %228 = arith.index_cast %227 : i32 to index
    %c0_48 = arith.constant 0 : index
    %229 = vector.load %arg8[%228, %c0_48] : memref<64x512xf32, #tpu.memory_space<vmem>>, vector<8x512xf32>
    %230 = arith.truncf %226 : vector<8x128xf32> to vector<8x128xbf16>
    %cst_49 = arith.constant dense<0.000000e+00> : vector<8x512xf32>
    %231 = tpu.matmul %230, %7, %cst_49 {dimension_numbers = #tpu.dot_dimension_numbers<[1], [0], [0], [1], [0, 0, 1, 1], [], []>} : vector<8x128xbf16>, vector<128x512xbf16>, vector<8x512xf32> -> vector<8x512xf32>
    %232 = arith.addf %229, %231 : vector<8x512xf32>
    %233 = vector.extract_strided_slice %232 {offsets = [0, 0], sizes = [8, 128], strides = [1, 1]} : vector<8x512xf32> to vector<8x128xf32>
    %234 = arith.negf %233 : vector<8x128xf32>
    %235 = math.exp %234 : vector<8x128xf32>
    %cst_50 = arith.constant 1.000000e+00 : f32
    %236 = vector.broadcast %cst_50 : f32 to vector<8x128xf32>
    %237 = arith.addf %236, %235 : vector<8x128xf32>
    %238 = arith.divf %236, %237 : vector<8x128xf32>
    %239 = vector.extract_strided_slice %232 {offsets = [0, 128], sizes = [8, 128], strides = [1, 1]} : vector<8x512xf32> to vector<8x128xf32>
    %240 = arith.negf %239 : vector<8x128xf32>
    %241 = math.exp %240 : vector<8x128xf32>
    %cst_51 = arith.constant 1.000000e+00 : f32
    %242 = vector.broadcast %cst_51 : f32 to vector<8x128xf32>
    %243 = arith.addf %242, %241 : vector<8x128xf32>
    %244 = arith.divf %242, %243 : vector<8x128xf32>
    %245 = vector.extract_strided_slice %232 {offsets = [0, 256], sizes = [8, 128], strides = [1, 1]} : vector<8x512xf32> to vector<8x128xf32>
    %246 = math.tanh %245 : vector<8x128xf32>
    %247 = vector.extract_strided_slice %232 {offsets = [0, 384], sizes = [8, 128], strides = [1, 1]} : vector<8x512xf32> to vector<8x128xf32>
    %248 = arith.negf %247 : vector<8x128xf32>
    %249 = math.exp %248 : vector<8x128xf32>
    %cst_52 = arith.constant 1.000000e+00 : f32
    %250 = vector.broadcast %cst_52 : f32 to vector<8x128xf32>
    %251 = arith.addf %250, %249 : vector<8x128xf32>
    %252 = arith.divf %250, %251 : vector<8x128xf32>
    %253 = arith.mulf %244, %224 : vector<8x128xf32>
    %254 = arith.mulf %238, %246 : vector<8x128xf32>
    %255 = arith.addf %253, %254 : vector<8x128xf32>
    %256 = math.tanh %255 : vector<8x128xf32>
    %257 = arith.mulf %252, %256 : vector<8x128xf32>
    %c0_53 = arith.constant 0 : index
    %c0_54 = arith.constant 0 : index
    %258 = vector.load %arg6[%c0_53, %c0_54] : memref<8x128xf32, #tpu.memory_space<vmem>>, vector<8x128xf32>
    tpu.vector_store %arg6[%c0_53, %c0_54], %257 {strides = array<i32>} : memref<8x128xf32, #tpu.memory_space<vmem>>, vector<8x128xf32>,
    %c0_55 = arith.constant 0 : index
    %c0_56 = arith.constant 0 : index
    %259 = vector.load %arg7[%c0_55, %c0_56] : memref<8x128xf32, #tpu.memory_space<vmem>>, vector<8x128xf32>
    tpu.vector_store %arg7[%c0_55, %c0_56], %255 {strides = array<i32>} : memref<8x128xf32, #tpu.memory_space<vmem>>, vector<8x128xf32>,
    return
  }
}

</mosaic_0001>

<bundles_post_ra>
// kernel: lstm_forward.1
= control target key start
LH: loop header
LB: loop body
LE: loop exit
PB: predicated region body
PF: predicated region fallthrough
CT: control target
= control target key end

     0   :  { %v2589_v2 = vmov 0   ;;  %vm101_vm0 = vcmask 130048   ;;  %s2581_s0 = inlined_call_operand.vmem [shape: bf16[64,16], index: 0, kind: input, shape index: {}]   ;;  %s2582_s1 = inlined_call_operand.vmem [shape: bf16[16,512], index: 1, kind: input, shape index: {}]   ;;  %s2583_s2 = inlined_call_operand.vmem [shape: f32[1,512], index: 2, kind: input, shape index: {}]   ;;  %s2584_s3 = inlined_call_operand.vmem [shape: bf16[128,512], index: 3, kind: input, shape index: {}]   ;;  %s2585_s4 = inlined_call_operand.vmem [shape: f32[8,128], index: 4, kind: input, shape index: {}]   ;;  %s2586_s5 = inlined_call_operand.vmem [shape: f32[8,128], index: 5, kind: input, shape index: {}]   ;;  %s2587_s6 = inlined_call_operand.vmem [shape: f32[8,128], index: 6, kind: output, shape index: {0}]   ;;  %s2588_s7 = inlined_call_operand.hbm [shape: f32[8,128], index: 7, kind: output, shape index: {1}]  }
   0x1   :  { %v1531_v0 = vld [vmem:[%s2582_s1 + $0x4] ss:$16 sps:$4 sm:$0xff]   ;;  %v1533_v1 = vld [vmem:[%s2582_s1 + $0xc] ss:$16 sps:$4 sm:$0xff]   ;;  %146 = vmatprep.mubr.bf16.mxu0 %v2589_v2  ;;  %219 = vmatprep.mubr.bf16.mxu1 %v2589_v2  ;;  %v1535_v3 = vld [vmem:[%s2582_s1] ss:$16 sps:$4 sm:$0xff]  }
   0x2   :  { %114 = vmatprep.subr.bf16.mxu0 %v1531_v0  ;;  %v1536_v4 = vld [vmem:[%s2582_s1 + $0x8] ss:$16 sps:$4 sm:$0xff]   ;;  %187 = vmatprep.subr.bf16.mxu1 %v1533_v1  ;;  %v1537_v5 = vld [vmem:[%s2581_s0] sm:$0xff]   ;;  %v1840_v7 = vld [vmem:[%s2584_s3 + $0xc] ss:$16 sps:$4 sm:$0xff]  }
   0x3   :  { %115 = vmatpush1.bf16.msra.mxu0 %v1535_v3  ;;  %188 = vmatpush1.bf16.msra.mxu1 %v1536_v4  ;;  %v1835_v6 = vld [vmem:[%s2584_s3 + $0x4] ss:$16 sps:$4 sm:$0xff]   ;;  %v1845_v8 = vld [vmem:[%s2584_s3] ss:$16 sps:$4 sm:$0xff]   ;;  %v1851_v9 = vld [vmem:[%s2584_s3 + $0x8] ss:$16 sps:$4 sm:$0xff]  }
   0x4   :  { %494 = vmatprep.subr.bf16.mxu0 %v1835_v6  ;;  %v1858_v10 = vld [vmem:[%s2584_s3 + $0x24] ss:$16 sps:$4 sm:$0xff]   ;;  %535 = vmatprep.subr.bf16.mxu1 %v1840_v7  ;;  %v1865_v11 = vld [vmem:[%s2584_s3 + $0x2c] ss:$16 sps:$4 sm:$0xff]   ;;  %v1870_v12 = vld [vmem:[%s2584_s3 + $0x20] ss:$16 sps:$4 sm:$0xff]  }
   0x5   :  { %v1875_v13 = vld [vmem:[%s2584_s3 + $0x28] ss:$16 sps:$4 sm:$0xff]   ;;  %v1887_v15 = vld [vmem:[%s2584_s3 + $0x44] ss:$16 sps:$4 sm:$0xff]   ;;  %v1893_v16 = vld [vmem:[%s2584_s3 + $0x4c] ss:$16 sps:$4 sm:$0xff]  }
   0x6   :  { %1465 = vmatmul.mubr.msk.bf16.vlgmr.msra.gmra.mrb[0].mxu0 %vm101_vm0, %v1537_v5  ;;  %1469 = vmatmul.mubr.msk.bf16.vlgmr.msra.gmra.mrb[0].mxu1 %vm101_vm0, %v1537_v5  ;;  %v1550_v14 = vld [vmem:[%s2581_s0 + $0x8] sm:$0xff]   ;;  %v1899_v17 = vld [vmem:[%s2584_s3 + $0x40] ss:$16 sps:$4 sm:$0xff]   ;;  %v1911_v19 = vld [vmem:[%s2584_s3 + $0x64] ss:$16 sps:$4 sm:$0xff]  }
   0x7   :  { %495 = vmatpush1.bf16.msra.mxu0 %v1845_v8  ;;  %536 = vmatpush1.bf16.msra.mxu1 %v1851_v9  ;;  %v1904_v18 = vld [vmem:[%s2584_s3 + $0x48] ss:$16 sps:$4 sm:$0xff]   ;;  %v1917_v20 = vld [vmem:[%s2584_s3 + $0x6c] ss:$16 sps:$4 sm:$0xff]   ;;  %v1924_v21 = vld [vmem:[%s2584_s3 + $0x60] ss:$16 sps:$4 sm:$0xff]  }
   0x8   :  { %496 = vmatprep.subr.bf16.mxu0 %v1858_v10  ;;  %537 = vmatprep.subr.bf16.mxu1 %v1865_v11  ;;  %v1930_v22 = vld [vmem:[%s2584_s3 + $0x68] ss:$16 sps:$4 sm:$0xff]   ;;  %v1938_v23 = vld [vmem:[%s2584_s3 + $0x84] ss:$16 sps:$4 sm:$0xff]   ;;  %v1945_v24 = vld [vmem:[%s2584_s3 + $0x8c] ss:$16 sps:$4 sm:$0xff]  }
   0x9   :  { %156 = vmatprep.mubr.bf16.mxu0 %v2589_v2  ;;  %229 = vmatprep.mubr.bf16.mxu1 %v2589_v2  ;;  %v1563_v25 = vld [vmem:[%s2581_s0 + $0x10] sm:$0xff]   ;;  %v1961_v27 = vld [vmem:[%s2584_s3 + $0x88] ss:$16 sps:$4 sm:$0xff]   ;;  %v1972_v29 = vld [vmem:[%s2584_s3 + $0xac] ss:$16 sps:$4 sm:$0xff]  }
   0xa   :  { %v1954_v26 = vld [vmem:[%s2584_s3 + $0x80] ss:$16 sps:$4 sm:$0xff]   ;;  %v1966_v28 = vld [vmem:[%s2584_s3 + $0xa4] ss:$16 sps:$4 sm:$0xff]   ;;  %v1985_v31 = vld [vmem:[%s2584_s3 + $0xa8] ss:$16 sps:$4 sm:$0xff]  }
   0xb   :  { %497 = vmatpush1.bf16.msra.mxu0 %v1870_v12  ;;  %538 = vmatpush1.bf16.msra.mxu1 %v1875_v13  ;;  %v1980_v30 = vld [vmem:[%s2584_s3 + $0xa0] ss:$16 sps:$4 sm:$0xff]   ;;  %v1993_v32 = vld [vmem:[%s2584_s3 + $0xc4] ss:$16 sps:$4 sm:$0xff]   ;;  %v2000_v33 = vld [vmem:[%s2584_s3 + $0xcc] ss:$16 sps:$4 sm:$0xff]  }
   0xc   :  { %498 = vmatprep.subr.bf16.mxu0 %v1887_v15  ;;  %539 = vmatprep.subr.bf16.mxu1 %v1893_v16  ;;  %v1576_v34 = vld [vmem:[%s2581_s0 + $0x18] sm:$0xff]   ;;  %v2009_v35 = vld [vmem:[%s2584_s3 + $0xc0] ss:$16 sps:$4 sm:$0xff]  }
   0xe   :  { %1466 = vmatmul.mubr.msk.bf16.gmra.mrb[4].mxu0 %vm101_vm0, %v1550_v14  ;;  %1470 = vmatmul.mubr.msk.bf16.gmra.mrb[4].mxu1 %vm101_vm0, %v1550_v14 }
   0xf   :  { %499 = vmatpush1.bf16.msra.mxu0 %v1899_v17  ;;  %166 = vmatprep.mubr.bf16.mxu0 %v2589_v2 }
  0x10   :  { %540 = vmatpush1.bf16.msra.mxu1 %v1904_v18  ;;  %500 = vmatprep.subr.bf16.mxu0 %v1911_v19 }
  0x11   :  { %541 = vmatprep.subr.bf16.mxu1 %v1917_v20  ;;  %239 = vmatprep.mubr.bf16.mxu1 %v2589_v2 }
  0x13   :  { %501 = vmatpush1.bf16.msra.mxu0 %v1924_v21 }
  0x14   :  { %542 = vmatpush1.bf16.msra.mxu1 %v1930_v22  ;;  %502 = vmatprep.subr.bf16.mxu0 %v1938_v23 }
  0x15   :  { %543 = vmatprep.subr.bf16.mxu1 %v1945_v24 }
  0x16   :  { %1467 = vmatmul.mubr.msk.bf16.gmra.mrb[8].mxu0 %vm101_vm0, %v1563_v25  ;;  %1471 = vmatmul.mubr.msk.bf16.gmra.mrb[8].mxu1 %vm101_vm0, %v1563_v25 }
  0x17   :  { %503 = vmatpush1.bf16.msra.mxu0 %v1954_v26  ;;  %176 = vmatprep.mubr.bf16.mxu0 %v2589_v2 }
  0x18   :  { %544 = vmatpush1.bf16.msra.mxu1 %v1961_v27  ;;  %504 = vmatprep.subr.bf16.mxu0 %v1966_v28 }
  0x19   :  { %545 = vmatprep.subr.bf16.mxu1 %v1972_v29  ;;  %249 = vmatprep.mubr.bf16.mxu1 %v2589_v2 }
  0x1b   :  { %505 = vmatpush1.bf16.msra.mxu0 %v1980_v30 }
  0x1c   :  { %13 = vsyncpa [#allocation4], 0  ;;  %546 = vmatpush1.bf16.msra.mxu1 %v1985_v31  ;;  %506 = vmatprep.subr.bf16.mxu0 %v1993_v32  ;;  %v2016_v36 = vld [vmem:[%s2584_s3 + $0xc8] ss:$16 sps:$4 sm:$0xff]   ;;  %v2021_v37 = vld [vmem:[%s2584_s3 + $0xe4] ss:$16 sps:$4 sm:$0xff]   ;;  %v41_v43 = vlaneseq }
  0x1d   :  { %547 = vmatprep.subr.bf16.mxu1 %v2000_v33  ;;  %v2027_v38 = vld [vmem:[%s2584_s3 + $0xec] ss:$16 sps:$4 sm:$0xff]   ;;  %v2035_v39 = vld [vmem:[%s2584_s3 + $0xe0] ss:$16 sps:$4 sm:$0xff]   ;;  %v2046_v41 = vld [vmem:[%s2584_s3 + $0xe8] ss:$16 sps:$4 sm:$0xff]  }
  0x1e   :  { %1468 = vmatmul.mubr.msk.bf16.gmra.mrb[12].mxu0 %vm101_vm0, %v1576_v34  ;;  %1472 = vmatmul.mubr.msk.bf16.gmra.mrb[12].mxu1 %vm101_vm0, %v1576_v34  ;;  %v324_v40 = vld [vmem:[%s2585_s4] sm:$0xff]  ;;  %v42_v44 = vshrl.u32 %v41_v43, 7 }
  0x1f   :  { %507 = vmatpush1.bf16.msra.mxu0 %v2009_v35  ;;  %526 = vmatprep.mubr.bf16.mxu0 %v2589_v2  ;;  %v333_v42 = vpack.c.bf16 %v324_v40, %v324_v40  ;;  %v39_v48 = vld [vmem:[%s2583_s2] sm:$0xf] }
  0x20   :  { %548 = vmatpush1.bf16.msra.mxu1 %v2016_v36  ;;  %508 = vmatprep.subr.bf16.mxu0 %v2021_v37  ;;  %v51_v45 = vsub.s32 2, %v42_v44  ;;  %v55_v46 = vsub.s32 3, %v42_v44  ;;  %v43_v47 = vsub.s32 0, %v42_v44  ;;  %v47_v49 = vsub.s32 1, %v42_v44 }
  0x21   :  { %549 = vmatprep.subr.bf16.mxu1 %v2027_v38  ;;  %567 = vmatprep.mubr.bf16.mxu1 %v2589_v2 }
  0x22   :  { %v2091_v50 = vrot.slane %v39_v48, %v51_v45  ;;  %v2097_v53 = vrot.slane %v39_v48, %v55_v46  ;;  %v44_v54 = vrot.slane %v39_v48, %v43_v47  ;;  %v48_v57 = vrot.slane %v39_v48, %v47_v49 }
  0x23   :  { %509 = vmatpush1.bf16.msra.mxu0 %v2035_v39 }
  0x24   :  { %550 = vmatpush1.bf16.msra.mxu1 %v2046_v41  ;;  %612 = vmatprep.subr.bf16.mxu0 %v1835_v6 }
  0x25   :  { %653 = vmatprep.subr.bf16.mxu1 %v1840_v7 }
  0x26   :  { %527 = vmatmul.mubr.bf16.vlgmr.msra.gmra.mrb[16].mxu0 %v333_v42 }
  0x27   :  { %568 = vmatmul.mubr.bf16.vlgmr.msra.gmra.mrb[16].mxu1 %v333_v42  ;;  %613 = vmatpush1.bf16.msra.mxu0 %v1845_v8 }
  0x28   :  { %654 = vmatpush1.bf16.msra.mxu1 %v1851_v9  ;;  %614 = vmatprep.subr.bf16.mxu0 %v1858_v10 }
  0x29   :  { %655 = vmatprep.subr.bf16.mxu1 %v1865_v11  ;;  %644 = vmatprep.mubr.bf16.mxu0 %v2589_v2 }
  0x2a   :  { %685 = vmatprep.mubr.bf16.mxu1 %v2589_v2 }
  0x2b   :  { %615 = vmatpush1.bf16.msra.mxu0 %v1870_v12 }
  0x2c   :  { %656 = vmatpush1.bf16.msra.mxu1 %v1875_v13  ;;  %616 = vmatprep.subr.bf16.mxu0 %v1887_v15 }
  0x2d   :  { %657 = vmatprep.subr.bf16.mxu1 %v1893_v16 }
  0x2f   :  { %617 = vmatpush1.bf16.msra.mxu0 %v1899_v17 }
  0x30   :  { %658 = vmatpush1.bf16.msra.mxu1 %v1904_v18  ;;  %618 = vmatprep.subr.bf16.mxu0 %v1911_v19 }
  0x31   :  { %659 = vmatprep.subr.bf16.mxu1 %v1917_v20 }
  0x33   :  { %619 = vmatpush1.bf16.msra.mxu0 %v1924_v21 }
  0x34   :  { %660 = vmatpush1.bf16.msra.mxu1 %v1930_v22  ;;  %620 = vmatprep.subr.bf16.mxu0 %v1938_v23 }
  0x35   :  { %661 = vmatprep.subr.bf16.mxu1 %v1945_v24 }
  0x37   :  { %621 = vmatpush1.bf16.msra.mxu0 %v1954_v26 }
  0x38   :  { %662 = vmatpush1.bf16.msra.mxu1 %v1961_v27  ;;  %622 = vmatprep.subr.bf16.mxu0 %v1966_v28 }
  0x39   :  { %663 = vmatprep.subr.bf16.mxu1 %v1972_v29 }
  0x3b   :  { %623 = vmatpush1.bf16.msra.mxu0 %v1980_v30 }
  0x3c   :  { %664 = vmatpush1.bf16.msra.mxu1 %v1985_v31  ;;  %624 = vmatprep.subr.bf16.mxu0 %v1993_v32 }
  0x3d   :  { %665 = vmatprep.subr.bf16.mxu1 %v2000_v33 }
  0x3f   :  { %625 = vmatpush1.bf16.msra.mxu0 %v2009_v35 }
  0x40   :  { %666 = vmatpush1.bf16.msra.mxu1 %v2016_v36  ;;  %626 = vmatprep.subr.bf16.mxu0 %v2021_v37 }
  0x41   :  { %667 = vmatprep.subr.bf16.mxu1 %v2027_v38 }
  0x43   :  { %627 = vmatpush1.bf16.msra.mxu0 %v2035_v39 }
  0x44   :  { %668 = vmatpush1.bf16.msra.mxu1 %v2046_v41  ;;  %730 = vmatprep.subr.bf16.mxu0 %v1835_v6 }
  0x45   :  { %771 = vmatprep.subr.bf16.mxu1 %v1840_v7 }
  0xd9   :  { %v2093_v51 = vpop.f32.mrb[0].mxu0  ;;  %v2095_v52 = vpop.f32.mrb[0].mxu1 }
  0xda   :  { %v150_v55 = vpop.f32.mrb[1].mxu0  ;;  %v223_v56 = vpop.f32.mrb[1].mxu1 }
  0xdb   :  { %v152_v58 = vpop.f32.mrb[2].mxu0  ;;  %v225_v59 = vpop.f32.mrb[2].mxu1 }
  0xdc   :  { %v2099_v60 = vadd.f32 %v152_v58, %v44_v54  ;;  %v154_v61 = vpop.f32.mrb[3].mxu0  ;;  %v2102_v62 = vadd.f32 %v225_v59, %v2091_v50  ;;  %v227_v63 = vpop.f32.mrb[3].mxu1 }
  0xdd   :  { %v2104_v0 = vadd.f32 %v154_v61, %v48_v57  ;;  %v2107_v1 = vadd.f32 %v227_v63, %v2097_v53 }
  0xe1   :  { %v158_v3 = vpop.f32.mrb[4].mxu0  ;;  %v231_v4 = vpop.f32.mrb[4].mxu1 }
  0xe2   :  { %v2109_v5 = vadd.f32 %v158_v3, %v44_v54  ;;  %v160_v14 = vpop.f32.mrb[5].mxu0  ;;  %v2112_v25 = vadd.f32 %v231_v4, %v2091_v50  ;;  %v233_v34 = vpop.f32.mrb[5].mxu1 }
  0xe3   :  { %v2114_v40 = vadd.f32 %v160_v14, %v48_v57  ;;  %v162_v42 = vpop.f32.mrb[6].mxu0  ;;  %v2117_v43 = vadd.f32 %v233_v34, %v2097_v53  ;;  %v235_v44 = vpop.f32.mrb[6].mxu1 }
  0xe4   :  { %v2119_v45 = vadd.f32 %v162_v42, %v44_v54  ;;  %v164_v46 = vpop.f32.mrb[7].mxu0  ;;  %v2122_v47 = vadd.f32 %v235_v44, %v2091_v50  ;;  %v237_v48 = vpop.f32.mrb[7].mxu1 }
  0xe5   :  { %2591 = vst [vmem:[#allocation6_spill] sm:$0xff] %v2117_v43  ;;  %v2124_v49 = vadd.f32 %v164_v46, %v48_v57  ;;  %v2127_v58 = vadd.f32 %v237_v48, %v2097_v53 }
  0xe6   :  { %2592 = vst [vmem:[#allocation7_spill] sm:$0xff] %v2119_v45  ;;  %2593 = vst [vmem:[#allocation8_spill] sm:$0xff] %v2122_v47 }
  0xe7   :  { %2594 = vst [vmem:[#allocation9_spill] sm:$0xff] %v2124_v49  ;;  %2595 = vst [vmem:[#allocation10_spill] sm:$0xff] %v2127_v58 }
  0xe9   :  { %v168_v59 = vpop.f32.mrb[8].mxu0  ;;  %v241_v61 = vpop.f32.mrb[8].mxu1 }
  0xea   :  { %v2129_v63 = vadd.f32 %v168_v59, %v44_v54  ;;  %v170_v3 = vpop.f32.mrb[9].mxu0  ;;  %v2132_v4 = vadd.f32 %v241_v61, %v2091_v50  ;;  %v243_v14 = vpop.f32.mrb[9].mxu1 }
  0xeb   :  { %v2134_v34 = vadd.f32 %v170_v3, %v48_v57  ;;  %v172_v42 = vpop.f32.mrb[10].mxu0  ;;  %v2137_v44 = vadd.f32 %v243_v14, %v2097_v53  ;;  %v245_v46 = vpop.f32.mrb[10].mxu1 }
  0xec   :  { %2596 = vst [vmem:[#allocation11_spill] sm:$0xff] %v2129_v63  ;;  %2597 = vst [vmem:[#allocation12_spill] sm:$0xff] %v2132_v4  ;;  %v2139_v2 = vadd.f32 %v172_v42, %v44_v54  ;;  %v174_v48 = vpop.f32.mrb[11].mxu0  ;;  %v2142_v58 = vadd.f32 %v245_v46, %v2091_v50  ;;  %v247_v59 = vpop.f32.mrb[11].mxu1 }
  0xed   :  { %2598 = vst [vmem:[#allocation13_spill] sm:$0xff] %v2134_v34  ;;  %2599 = vst [vmem:[#allocation14_spill] sm:$0xff] %v2137_v44  ;;  %v2144_v63 = vadd.f32 %v174_v48, %v48_v57  ;;  %v2147_v61 = vadd.f32 %v247_v59, %v2097_v53 }
  0xee   :  { %2600 = vst [vmem:[#allocation15_spill] sm:$0xff] %v2139_v2  ;;  %2601 = vst [vmem:[#allocation16_spill] sm:$0xff] %v2142_v58 }
  0xef   :  { %2602 = vst [vmem:[#allocation17_spill] sm:$0xff] %v2144_v63  ;;  %2603 = vst [vmem:[#allocation18_spill] sm:$0xff] %v2147_v61 }
  0xf1   :  { %v178_v4 = vpop.f32.mrb[12].mxu0  ;;  %v251_v3 = vpop.f32.mrb[12].mxu1 }
  0xf2   :  { %v2149_v34 = vadd.f32 %v178_v4, %v44_v54  ;;  %v180_v49 = vpop.f32.mrb[13].mxu0  ;;  %v2152_v14 = vadd.f32 %v251_v3, %v2091_v50  ;;  %v253_v42 = vpop.f32.mrb[13].mxu1 }
  0xf3   :  { %v2154_v2 = vadd.f32 %v180_v49, %v48_v57  ;;  %v182_v44 = vpop.f32.mrb[14].mxu0  ;;  %v2157_v46 = vadd.f32 %v253_v42, %v2097_v53  ;;  %v255_v48 = vpop.f32.mrb[14].mxu1  ;;  %v149_v49 = vadd.f32 %v2093_v51, %v44_v54  ;;  %v222_v42 = vadd.f32 %v2095_v52, %v2091_v50 }
  0xf4   :  { %2604 = vst [vmem:[#allocation19_spill] sm:$0xff] %v2149_v34  ;;  %2605 = vst [vmem:[#allocation20_spill] sm:$0xff] %v2152_v14  ;;  %v2159_v63 = vadd.f32 %v182_v44, %v44_v54  ;;  %v184_v59 = vpop.f32.mrb[15].mxu0  ;;  %v2162_v61 = vadd.f32 %v255_v48, %v2091_v50  ;;  %v257_v4 = vpop.f32.mrb[15].mxu1  ;;  %v224_v44 = vadd.f32 %v223_v56, %v2097_v53 }
  0xf5   :  { %2606 = vst [vmem:[#allocation21_spill] sm:$0xff] %v2154_v2  ;;  %2607 = vst [vmem:[#allocation22_spill] sm:$0xff] %v2157_v46  ;;  %v2164_v34 = vadd.f32 %v184_v59, %v48_v57  ;;  %v2167_v3 = vadd.f32 %v257_v4, %v2097_v53  ;;  %v151_v2 = vadd.f32 %v150_v55, %v48_v57  ;;  %v325_v57 = vld [vmem:[%s2586_s5] sm:$0xff] }
  0xf6   :  { %2608 = vst [vmem:[#allocation23_spill] sm:$0xff] %v2159_v63  ;;  %2609 = vst [vmem:[#allocation24_spill] sm:$0xff] %v2162_v61 }
  0xf7   :  { %2610 = vst [vmem:[#allocation25_spill] sm:$0xff] %v2164_v34  ;;  %2611 = vst [vmem:[#allocation26_spill] sm:$0xff] %v2167_v3 }
  0xf9   :  { %v528_v46 = vpop.f32.mrb[16].mxu0 }
  0xfa   :  { %v576_v63 = vadd.f32 %v528_v46, %v149_v49  ;;  %v569_v14 = vpop.f32.mrb[16].mxu1  ;;  %v530_v58 = vpop.f32.mrb[17].mxu0  ;;  %v2612_v49 = vmov 0  }
  0xfb   :  { %v578_v48 = vadd.f32 %v569_v14, %v222_v42  ;;  %v577_v61 = vadd.f32 %v530_v58, %v151_v2  ;;  %v571_v47 = vpop.f32.mrb[17].mxu1  ;;  %v532_v59 = vpop.f32.mrb[18].mxu0 }
  0xfc   :  { %v1505_v34 = vmul.f32 -1.442695, %v576_v63  ;;  %v579_v45 = vadd.f32 %v571_v47, %v224_v44  ;;  %v533_v4 = vpop.f32.mrb[19].mxu0  ;;  %v573_v3 = vpop.f32.mrb[18].mxu1 }
  0xfd   :  { %v1506_v43 = vmul.f32 -1.442695, %v577_v61  ;;  %v574_v51 = vpop.f32.mrb[19].mxu1 }
  0xfe   :  { %1589 = vpow2.f32 %v1505_v34  ;;  %v1507_v54 = vmul.f32 -1.442695, %v579_v45 }
  0xff   :  { %1591 = vpow2.f32 %v1506_v43 }
 0x100   :  { %1593 = vpow2.f32 %v1507_v54 }
 0x101   :  { %1595 = vtanh.f32 %v578_v48 }
 0x108   :  { %v1590_v50 = vpop.eup %1589 }
 0x109   :  { %v1592_v52 = vpop.eup %1591  ;;  %v583_v55 = vadd.f32 1.0, %v1590_v50 }
 0x10a   :  { %v589_v53 = vadd.f32 1.0, %v1592_v52  ;;  %v1594_v2 = vpop.eup %1593 }
 0x10b   :  { %1597 = vrcp.f32 %v583_v55  ;;  %v1596_v56 = vpop.eup %1595  ;;  %v596_v34 = vadd.f32 1.0, %v1594_v2 }
 0x10c   :  { %1599 = vrcp.f32 %v589_v53 }
 0x10d   :  { %1601 = vrcp.f32 %v596_v34 }
 0x115   :  { %v1598_v47 = vpop.eup %1597 }
 0x116   :  { %v1600_v58 = vpop.eup %1599  ;;  %v600_v63 = vmul.f32 %v1598_v47, %v1596_v56 }
 0x117   :  { %v599_v43 = vmul.f32 %v1600_v58, %v325_v57  ;;  %v1602_v61 = vpop.eup %1601 }
 0x119   :  { %v2176_v45 = vadd.f32 %v600_v63, %v599_v43 }
 0x11b   :  { %1603 = vtanh.f32 %v2176_v45 }
 0x125   :  { %v1604_v14 = vpop.eup %1603 }
 0x126   :  { %v603_v46 = vmul.f32 %v1604_v14, %v1602_v61 }
 0x128   :  { %v611_v3 = vpack.c.bf16 %v603_v46, %v603_v46 }
 0x12a   :  { %645 = vmatmul.mubr.bf16.vlgmr.msra.gmra.mrb[20].mxu0 %v611_v3  ;;  %686 = vmatmul.mubr.bf16.vlgmr.msra.gmra.mrb[20].mxu1 %v611_v3 }
 0x12b   :  { %731 = vmatpush1.bf16.msra.mxu0 %v1845_v8  ;;  %772 = vmatpush1.bf16.msra.mxu1 %v1851_v9 }
 0x12c   :  { %732 = vmatprep.subr.bf16.mxu0 %v1858_v10  ;;  %773 = vmatprep.subr.bf16.mxu1 %v1865_v11 }
 0x12d   :  { %762 = vmatprep.mubr.bf16.mxu0 %v2612_v49  ;;  %803 = vmatprep.mubr.bf16.mxu1 %v2612_v49 }
 0x12f   :  { %733 = vmatpush1.bf16.msra.mxu0 %v1870_v12  ;;  %774 = vmatpush1.bf16.msra.mxu1 %v1875_v13 }
 0x130   :  { %734 = vmatprep.subr.bf16.mxu0 %v1887_v15  ;;  %775 = vmatprep.subr.bf16.mxu1 %v1893_v16 }
 0x133   :  { %735 = vmatpush1.bf16.msra.mxu0 %v1899_v17  ;;  %776 = vmatpush1.bf16.msra.mxu1 %v1904_v18 }
 0x134   :  { %736 = vmatprep.subr.bf16.mxu0 %v1911_v19  ;;  %777 = vmatprep.subr.bf16.mxu1 %v1917_v20 }
 0x137   :  { %737 = vmatpush1.bf16.msra.mxu0 %v1924_v21  ;;  %778 = vmatpush1.bf16.msra.mxu1 %v1930_v22 }
 0x138   :  { %738 = vmatprep.subr.bf16.mxu0 %v1938_v23  ;;  %779 = vmatprep.subr.bf16.mxu1 %v1945_v24 }
 0x13b   :  { %739 = vmatpush1.bf16.msra.mxu0 %v1954_v26  ;;  %780 = vmatpush1.bf16.msra.mxu1 %v1961_v27 }
 0x13c   :  { %740 = vmatprep.subr.bf16.mxu0 %v1966_v28  ;;  %781 = vmatprep.subr.bf16.mxu1 %v1972_v29 }
 0x13f   :  { %741 = vmatpush1.bf16.msra.mxu0 %v1980_v30  ;;  %782 = vmatpush1.bf16.msra.mxu1 %v1985_v31 }
 0x140   :  { %742 = vmatprep.subr.bf16.mxu0 %v1993_v32  ;;  %783 = vmatprep.subr.bf16.mxu1 %v2000_v33 }
 0x143   :  { %743 = vmatpush1.bf16.msra.mxu0 %v2009_v35  ;;  %784 = vmatpush1.bf16.msra.mxu1 %v2016_v36 }
 0x144   :  { %744 = vmatprep.subr.bf16.mxu0 %v2021_v37  ;;  %785 = vmatprep.subr.bf16.mxu1 %v2027_v38 }
 0x147   :  { %745 = vmatpush1.bf16.msra.mxu0 %v2035_v39  ;;  %786 = vmatpush1.bf16.msra.mxu1 %v2046_v41 }
 0x148   :  { %848 = vmatprep.subr.bf16.mxu0 %v1835_v6  ;;  %889 = vmatprep.subr.bf16.mxu1 %v1840_v7 }
 0x1fd   :  { %v646_v42 = vpop.f32.mrb[20].mxu0  ;;  %v687_v44 = vpop.f32.mrb[20].mxu1 }
 0x1fe   :  { %v694_v48 = vadd.f32 %v646_v42, %v2099_v60  ;;  %v696_v59 = vadd.f32 %v687_v44, %v2102_v62  ;;  %v648_v4 = vpop.f32.mrb[21].mxu0  ;;  %v689_v51 = vpop.f32.mrb[21].mxu1 }
 0x1ff   :  { %v695_v54 = vadd.f32 %v648_v4, %v2104_v0  ;;  %v697_v50 = vadd.f32 %v689_v51, %v2107_v1  ;;  %v650_v52 = vpop.f32.mrb[22].mxu0  ;;  %v691_v55 = vpop.f32.mrb[22].mxu1 }
 0x200   :  { %v1508_v53 = vmul.f32 -1.442695, %v694_v48  ;;  %v651_v2 = vpop.f32.mrb[23].mxu0  ;;  %v692_v56 = vpop.f32.mrb[23].mxu1 }
 0x201   :  { %v1509_v57 = vmul.f32 -1.442695, %v695_v54  ;;  %v1510_v47 = vmul.f32 -1.442695, %v697_v50 }
 0x202   :  { %1605 = vpow2.f32 %v1508_v53  ;;  %v2613_v53 = vld [vmem:[#allocation6_spill] sm:$0xff] }
 0x203   :  { %1607 = vpow2.f32 %v1509_v57 }
 0x204   :  { %1609 = vpow2.f32 %v1510_v47 }
 0x205   :  { %1611 = vtanh.f32 %v696_v59 }
 0x20c   :  { %v1606_v58 = vpop.eup %1605 }
 0x20d   :  { %v1608_v63 = vpop.eup %1607  ;;  %v701_v60 = vadd.f32 1.0, %v1606_v58 }
 0x20e   :  { %v707_v62 = vadd.f32 1.0, %v1608_v63  ;;  %v1610_v0 = vpop.eup %1609 }
 0x20f   :  { %1613 = vrcp.f32 %v701_v60  ;;  %v1612_v34 = vpop.eup %1611  ;;  %v714_v14 = vadd.f32 1.0, %v1610_v0 }
 0x210   :  { %1615 = vrcp.f32 %v707_v62 }
 0x211   :  { %1617 = vrcp.f32 %v714_v14 }
 0x219   :  { %v1614_v1 = vpop.eup %1613 }
 0x21a   :  { %v1616_v43 = vpop.eup %1615  ;;  %v718_v61 = vmul.f32 %v1614_v1, %v1612_v34 }
 0x21b   :  { %v717_v46 = vmul.f32 %v1616_v43, %v2176_v45  ;;  %v1618_v42 = vpop.eup %1617 }
 0x21d   :  { %v2218_v3 = vadd.f32 %v718_v61, %v717_v46 }
 0x21f   :  { %1619 = vtanh.f32 %v2218_v3 }
 0x229   :  { %v1620_v44 = vpop.eup %1619 }
 0x22a   :  { %v721_v48 = vmul.f32 %v1620_v44, %v1618_v42 }
 0x22c   :  { %v729_v59 = vpack.c.bf16 %v721_v48, %v721_v48 }
 0x22e   :  { %763 = vmatmul.mubr.bf16.vlgmr.msra.gmra.mrb[24].mxu0 %v729_v59  ;;  %804 = vmatmul.mubr.bf16.vlgmr.msra.gmra.mrb[24].mxu1 %v729_v59 }
 0x22f   :  { %849 = vmatpush1.bf16.msra.mxu0 %v1845_v8  ;;  %890 = vmatpush1.bf16.msra.mxu1 %v1851_v9 }
 0x230   :  { %850 = vmatprep.subr.bf16.mxu0 %v1858_v10  ;;  %891 = vmatprep.subr.bf16.mxu1 %v1865_v11 }
 0x231   :  { %880 = vmatprep.mubr.bf16.mxu0 %v2612_v49  ;;  %921 = vmatprep.mubr.bf16.mxu1 %v2612_v49 }
 0x233   :  { %851 = vmatpush1.bf16.msra.mxu0 %v1870_v12  ;;  %892 = vmatpush1.bf16.msra.mxu1 %v1875_v13 }
 0x234   :  { %852 = vmatprep.subr.bf16.mxu0 %v1887_v15  ;;  %893 = vmatprep.subr.bf16.mxu1 %v1893_v16 }
 0x237   :  { %853 = vmatpush1.bf16.msra.mxu0 %v1899_v17  ;;  %894 = vmatpush1.bf16.msra.mxu1 %v1904_v18 }
 0x238   :  { %854 = vmatprep.subr.bf16.mxu0 %v1911_v19  ;;  %895 = vmatprep.subr.bf16.mxu1 %v1917_v20 }
 0x23b   :  { %855 = vmatpush1.bf16.msra.mxu0 %v1924_v21  ;;  %896 = vmatpush1.bf16.msra.mxu1 %v1930_v22 }
 0x23c   :  { %856 = vmatprep.subr.bf16.mxu0 %v1938_v23  ;;  %897 = vmatprep.subr.bf16.mxu1 %v1945_v24 }
 0x23f   :  { %857 = vmatpush1.bf16.msra.mxu0 %v1954_v26  ;;  %898 = vmatpush1.bf16.msra.mxu1 %v1961_v27 }
 0x240   :  { %858 = vmatprep.subr.bf16.mxu0 %v1966_v28  ;;  %899 = vmatprep.subr.bf16.mxu1 %v1972_v29 }
 0x243   :  { %859 = vmatpush1.bf16.msra.mxu0 %v1980_v30  ;;  %900 = vmatpush1.bf16.msra.mxu1 %v1985_v31 }
 0x244   :  { %860 = vmatprep.subr.bf16.mxu0 %v1993_v32  ;;  %901 = vmatprep.subr.bf16.mxu1 %v2000_v33 }
 0x247   :  { %861 = vmatpush1.bf16.msra.mxu0 %v2009_v35  ;;  %902 = vmatpush1.bf16.msra.mxu1 %v2016_v36 }
 0x248   :  { %862 = vmatprep.subr.bf16.mxu0 %v2021_v37  ;;  %903 = vmatprep.subr.bf16.mxu1 %v2027_v38 }
 0x24b   :  { %863 = vmatpush1.bf16.msra.mxu0 %v2035_v39  ;;  %904 = vmatpush1.bf16.msra.mxu1 %v2046_v41 }
 0x24c   :  { %966 = vmatprep.subr.bf16.mxu0 %v1835_v6  ;;  %1007 = vmatprep.subr.bf16.mxu1 %v1840_v7 }
 0x301   :  { %v764_v45 = vpop.f32.mrb[24].mxu0  ;;  %v805_v4 = vpop.f32.mrb[24].mxu1 }
 0x302   :  { %v812_v51 = vadd.f32 %v764_v45, %v2109_v5  ;;  %v814_v54 = vadd.f32 %v805_v4, %v2112_v25  ;;  %v766_v50 = vpop.f32.mrb[25].mxu0  ;;  %v807_v52 = vpop.f32.mrb[25].mxu1 }
 0x303   :  { %v813_v55 = vadd.f32 %v766_v50, %v2114_v40  ;;  %v815_v2 = vadd.f32 %v807_v52, %v2613_v53  ;;  %v768_v56 = vpop.f32.mrb[26].mxu0  ;;  %v809_v57 = vpop.f32.mrb[26].mxu1  ;;  %v2615_v52 = vld [vmem:[#allocation8_spill] sm:$0xff] }
 0x304   :  { %v1511_v47 = vmul.f32 -1.442695, %v812_v51  ;;  %v769_v58 = vpop.f32.mrb[27].mxu0  ;;  %v810_v63 = vpop.f32.mrb[27].mxu1  ;;  %v2616_v56 = vld [vmem:[#allocation9_spill] sm:$0xff] }
 0x305   :  { %v1512_v60 = vmul.f32 -1.442695, %v813_v55  ;;  %v1513_v62 = vmul.f32 -1.442695, %v815_v2 }
 0x306   :  { %1621 = vpow2.f32 %v1511_v47  ;;  %v2617_v47 = vld [vmem:[#allocation10_spill] sm:$0xff] }
 0x307   :  { %1623 = vpow2.f32 %v1512_v60 }
 0x308   :  { %1625 = vpow2.f32 %v1513_v62 }
 0x309   :  { %1627 = vtanh.f32 %v814_v54  ;;  %v2614_v54 = vld [vmem:[#allocation7_spill] sm:$0xff] }
 0x310   :  { %v1622_v0 = vpop.eup %1621 }
 0x311   :  { %v1624_v34 = vpop.eup %1623  ;;  %v819_v5 = vadd.f32 1.0, %v1622_v0 }
 0x312   :  { %v825_v25 = vadd.f32 1.0, %v1624_v34  ;;  %v1626_v40 = vpop.eup %1625 }
 0x313   :  { %1629 = vrcp.f32 %v819_v5  ;;  %v1628_v1 = vpop.eup %1627  ;;  %v832_v46 = vadd.f32 1.0, %v1626_v40 }
 0x314   :  { %1631 = vrcp.f32 %v825_v25 }
 0x315   :  { %1633 = vrcp.f32 %v832_v46 }
 0x31d   :  { %v1630_v43 = vpop.eup %1629 }
 0x31e   :  { %v1632_v61 = vpop.eup %1631  ;;  %v836_v14 = vmul.f32 %v1630_v43, %v1628_v1 }
 0x31f   :  { %v835_v42 = vmul.f32 %v1632_v61, %v2218_v3  ;;  %v1634_v48 = vpop.eup %1633 }
 0x321   :  { %v2260_v44 = vadd.f32 %v836_v14, %v835_v42 }
 0x323   :  { %1635 = vtanh.f32 %v2260_v44 }
 0x32d   :  { %v1636_v59 = vpop.eup %1635 }
 0x32e   :  { %v839_v45 = vmul.f32 %v1636_v59, %v1634_v48 }
 0x330   :  { %v847_v4 = vpack.c.bf16 %v839_v45, %v839_v45 }
 0x332   :  { %881 = vmatmul.mubr.bf16.vlgmr.msra.gmra.mrb[28].mxu0 %v847_v4  ;;  %922 = vmatmul.mubr.bf16.vlgmr.msra.gmra.mrb[28].mxu1 %v847_v4 }
 0x333   :  { %967 = vmatpush1.bf16.msra.mxu0 %v1845_v8  ;;  %1008 = vmatpush1.bf16.msra.mxu1 %v1851_v9 }
 0x334   :  { %968 = vmatprep.subr.bf16.mxu0 %v1858_v10  ;;  %1009 = vmatprep.subr.bf16.mxu1 %v1865_v11 }
 0x335   :  { %998 = vmatprep.mubr.bf16.mxu0 %v2612_v49  ;;  %1039 = vmatprep.mubr.bf16.mxu1 %v2612_v49 }
 0x337   :  { %969 = vmatpush1.bf16.msra.mxu0 %v1870_v12  ;;  %1010 = vmatpush1.bf16.msra.mxu1 %v1875_v13 }
 0x338   :  { %970 = vmatprep.subr.bf16.mxu0 %v1887_v15  ;;  %1011 = vmatprep.subr.bf16.mxu1 %v1893_v16 }
 0x33b   :  { %971 = vmatpush1.bf16.msra.mxu0 %v1899_v17  ;;  %1012 = vmatpush1.bf16.msra.mxu1 %v1904_v18 }
 0x33c   :  { %972 = vmatprep.subr.bf16.mxu0 %v1911_v19  ;;  %1013 = vmatprep.subr.bf16.mxu1 %v1917_v20 }
 0x33f   :  { %973 = vmatpush1.bf16.msra.mxu0 %v1924_v21  ;;  %1014 = vmatpush1.bf16.msra.mxu1 %v1930_v22 }
 0x340   :  { %974 = vmatprep.subr.bf16.mxu0 %v1938_v23  ;;  %1015 = vmatprep.subr.bf16.mxu1 %v1945_v24 }
 0x343   :  { %975 = vmatpush1.bf16.msra.mxu0 %v1954_v26  ;;  %1016 = vmatpush1.bf16.msra.mxu1 %v1961_v27 }
 0x344   :  { %976 = vmatprep.subr.bf16.mxu0 %v1966_v28  ;;  %1017 = vmatprep.subr.bf16.mxu1 %v1972_v29 }
 0x347   :  { %977 = vmatpush1.bf16.msra.mxu0 %v1980_v30  ;;  %1018 = vmatpush1.bf16.msra.mxu1 %v1985_v31 }
 0x348   :  { %978 = vmatprep.subr.bf16.mxu0 %v1993_v32  ;;  %1019 = vmatprep.subr.bf16.mxu1 %v2000_v33 }
 0x34b   :  { %979 = vmatpush1.bf16.msra.mxu0 %v2009_v35  ;;  %1020 = vmatpush1.bf16.msra.mxu1 %v2016_v36 }
 0x34c   :  { %980 = vmatprep.subr.bf16.mxu0 %v2021_v37  ;;  %1021 = vmatprep.subr.bf16.mxu1 %v2027_v38 }
 0x34f   :  { %981 = vmatpush1.bf16.msra.mxu0 %v2035_v39  ;;  %1022 = vmatpush1.bf16.msra.mxu1 %v2046_v41 }
 0x350   :  { %1084 = vmatprep.subr.bf16.mxu0 %v1835_v6  ;;  %1125 = vmatprep.subr.bf16.mxu1 %v1840_v7 }
 0x405   :  { %v882_v3 = vpop.f32.mrb[28].mxu0  ;;  %v923_v51 = vpop.f32.mrb[28].mxu1 }
 0x406   :  { %v930_v50 = vadd.f32 %v882_v3, %v2614_v54  ;;  %v932_v55 = vadd.f32 %v923_v51, %v2615_v52  ;;  %v884_v53 = vpop.f32.mrb[29].mxu0  ;;  %v925_v2 = vpop.f32.mrb[29].mxu1 }
 0x407   :  { %v931_v57 = vadd.f32 %v884_v53, %v2616_v56  ;;  %v933_v58 = vadd.f32 %v925_v2, %v2617_v47  ;;  %v886_v63 = vpop.f32.mrb[30].mxu0  ;;  %v927_v60 = vpop.f32.mrb[30].mxu1 }
 0x408   :  { %v1514_v62 = vmul.f32 -1.442695, %v930_v50  ;;  %v887_v0 = vpop.f32.mrb[31].mxu0  ;;  %v928_v34 = vpop.f32.mrb[31].mxu1 }
 0x409   :  { %v1515_v6 = vmul.f32 -1.442695, %v931_v57  ;;  %v1516_v7 = vmul.f32 -1.442695, %v933_v58 }
 0x40a   :  { %1637 = vpow2.f32 %v1514_v62 }
 0x40b   :  { %1639 = vpow2.f32 %v1515_v6  ;;  %v2360_v6 = vld [vmem:[%s2584_s3] ss:$16 sps:$4 sm:$0xff]  }
 0x40c   :  { %1641 = vpow2.f32 %v1516_v7  ;;  %v2366_v7 = vld [vmem:[%s2584_s3 + $0x8] ss:$16 sps:$4 sm:$0xff]  }
 0x40d   :  { %1643 = vtanh.f32 %v932_v55 }
 0x414   :  { %v1638_v5 = vpop.eup %1637 }
 0x415   :  { %v1640_v25 = vpop.eup %1639  ;;  %v937_v40 = vadd.f32 1.0, %v1638_v5  ;;  %v2372_v5 = vld [vmem:[%s2584_s3 + $0x24] ss:$16 sps:$4 sm:$0xff]  }
 0x416   :  { %v943_v1 = vadd.f32 1.0, %v1640_v25  ;;  %v1642_v43 = vpop.eup %1641  ;;  %v2378_v25 = vld [vmem:[%s2584_s3 + $0x2c] ss:$16 sps:$4 sm:$0xff]  }
 0x417   :  { %1645 = vrcp.f32 %v937_v40  ;;  %v1644_v61 = vpop.eup %1643  ;;  %v950_v48 = vadd.f32 1.0, %v1642_v43  ;;  %v2386_v40 = vld [vmem:[%s2584_s3 + $0x20] ss:$16 sps:$4 sm:$0xff]   ;;  %v2398_v43 = vld [vmem:[%s2584_s3 + $0x44] ss:$16 sps:$4 sm:$0xff]  }
 0x418   :  { %1647 = vrcp.f32 %v943_v1  ;;  %v2392_v1 = vld [vmem:[%s2584_s3 + $0x28] ss:$16 sps:$4 sm:$0xff]  }
 0x419   :  { %1649 = vrcp.f32 %v950_v48  ;;  %v2428_v48 = vld [vmem:[%s2584_s3 + $0x6c] ss:$16 sps:$4 sm:$0xff]  }
 0x421   :  { %v1646_v14 = vpop.eup %1645 }
 0x422   :  { %v1648_v46 = vpop.eup %1647  ;;  %v954_v42 = vmul.f32 %v1646_v14, %v1644_v61  ;;  %v2404_v61 = vld [vmem:[%s2584_s3 + $0x4c] ss:$16 sps:$4 sm:$0xff]   ;;  %v2410_v14 = vld [vmem:[%s2584_s3 + $0x40] ss:$16 sps:$4 sm:$0xff]  }
 0x423   :  { %v953_v59 = vmul.f32 %v1648_v46, %v2260_v44  ;;  %v1650_v4 = vpop.eup %1649  ;;  %v2416_v46 = vld [vmem:[%s2584_s3 + $0x48] ss:$16 sps:$4 sm:$0xff]  }
 0x425   :  { %v2302_v45 = vadd.f32 %v954_v42, %v953_v59  ;;  %v2422_v42 = vld [vmem:[%s2584_s3 + $0x64] ss:$16 sps:$4 sm:$0xff]   ;;  %v2434_v59 = vld [vmem:[%s2584_s3 + $0x60] ss:$16 sps:$4 sm:$0xff]  }
 0x427   :  { %1651 = vtanh.f32 %v2302_v45 }
 0x431   :  { %v1652_v3 = vpop.eup %1651 }
 0x432   :  { %v957_v51 = vmul.f32 %v1652_v3, %v1650_v4  ;;  %v2446_v4 = vld [vmem:[%s2584_s3 + $0x84] ss:$16 sps:$4 sm:$0xff]   ;;  %v2452_v3 = vld [vmem:[%s2584_s3 + $0x8c] ss:$16 sps:$4 sm:$0xff]  }
 0x434   :  { %v965_v54 = vpack.c.bf16 %v957_v51, %v957_v51  ;;  %v2458_v51 = vld [vmem:[%s2584_s3 + $0x80] ss:$16 sps:$4 sm:$0xff]  }
 0x436   :  { %999 = vmatmul.mubr.bf16.vlgmr.msra.gmra.mrb[32].mxu0 %v965_v54  ;;  %1040 = vmatmul.mubr.bf16.vlgmr.msra.gmra.mrb[32].mxu1 %v965_v54  ;;  %v2464_v54 = vld [vmem:[%s2584_s3 + $0x88] ss:$16 sps:$4 sm:$0xff]  }
 0x437   :  { %1085 = vmatpush1.bf16.msra.mxu0 %v1845_v8  ;;  %1126 = vmatpush1.bf16.msra.mxu1 %v1851_v9  ;;  %v2340_v8 = vld [vmem:[%s2584_s3 + $0x4] ss:$16 sps:$4 sm:$0xff]   ;;  %v2346_v9 = vld [vmem:[%s2584_s3 + $0xc] ss:$16 sps:$4 sm:$0xff]  }
 0x438   :  { %1086 = vmatprep.subr.bf16.mxu0 %v1858_v10  ;;  %1127 = vmatprep.subr.bf16.mxu1 %v1865_v11 }
 0x439   :  { %1116 = vmatprep.mubr.bf16.mxu0 %v2612_v49  ;;  %1157 = vmatprep.mubr.bf16.mxu1 %v2612_v49 }
 0x43b   :  { %1087 = vmatpush1.bf16.msra.mxu0 %v1870_v12  ;;  %1128 = vmatpush1.bf16.msra.mxu1 %v1875_v13  ;;  %v2618_v12 = vld [vmem:[#allocation11_spill] sm:$0xff] }
 0x43c   :  { %1088 = vmatprep.subr.bf16.mxu0 %v1887_v15  ;;  %1129 = vmatprep.subr.bf16.mxu1 %v1893_v16  ;;  %v2619_v15 = vld [vmem:[#allocation12_spill] sm:$0xff] }
 0x43f   :  { %1089 = vmatpush1.bf16.msra.mxu0 %v1899_v17  ;;  %1130 = vmatpush1.bf16.msra.mxu1 %v1904_v18 }
 0x440   :  { %1090 = vmatprep.subr.bf16.mxu0 %v1911_v19  ;;  %1131 = vmatprep.subr.bf16.mxu1 %v1917_v20  ;;  %v2620_v19 = vld [vmem:[#allocation13_spill] sm:$0xff] }
 0x443   :  { %1091 = vmatpush1.bf16.msra.mxu0 %v1924_v21  ;;  %1132 = vmatpush1.bf16.msra.mxu1 %v1930_v22  ;;  %v2621_v21 = vld [vmem:[#allocation14_spill] sm:$0xff] }
 0x444   :  { %1092 = vmatprep.subr.bf16.mxu0 %v1938_v23  ;;  %1133 = vmatprep.subr.bf16.mxu1 %v1945_v24 }
 0x447   :  { %1093 = vmatpush1.bf16.msra.mxu0 %v1954_v26  ;;  %1134 = vmatpush1.bf16.msra.mxu1 %v1961_v27 }
 0x448   :  { %1094 = vmatprep.subr.bf16.mxu0 %v1966_v28  ;;  %1135 = vmatprep.subr.bf16.mxu1 %v1972_v29 }
 0x44b   :  { %1095 = vmatpush1.bf16.msra.mxu0 %v1980_v30  ;;  %1136 = vmatpush1.bf16.msra.mxu1 %v1985_v31 }
 0x44c   :  { %1096 = vmatprep.subr.bf16.mxu0 %v1993_v32  ;;  %1137 = vmatprep.subr.bf16.mxu1 %v2000_v33 }
 0x44f   :  { %1097 = vmatpush1.bf16.msra.mxu0 %v2009_v35  ;;  %1138 = vmatpush1.bf16.msra.mxu1 %v2016_v36 }
 0x450   :  { %1098 = vmatprep.subr.bf16.mxu0 %v2021_v37  ;;  %1139 = vmatprep.subr.bf16.mxu1 %v2027_v38 }
 0x453   :  { %1099 = vmatpush1.bf16.msra.mxu0 %v2035_v39  ;;  %1140 = vmatpush1.bf16.msra.mxu1 %v2046_v41 }
 0x454   :  { %1202 = vmatprep.subr.bf16.mxu0 %v2340_v8  ;;  %1243 = vmatprep.subr.bf16.mxu1 %v2346_v9 }
 0x509   :  { %v1000_v10 = vpop.f32.mrb[32].mxu0  ;;  %v1041_v11 = vpop.f32.mrb[32].mxu1 }
 0x50a   :  { %v1048_v13 = vadd.f32 %v1000_v10, %v2618_v12  ;;  %v1050_v16 = vadd.f32 %v1041_v11, %v2619_v15  ;;  %v1002_v17 = vpop.f32.mrb[33].mxu0  ;;  %v1043_v18 = vpop.f32.mrb[33].mxu1  ;;  %v2470_v10 = vld [vmem:[%s2584_s3 + $0xa4] ss:$16 sps:$4 sm:$0xff]   ;;  %v2476_v11 = vld [vmem:[%s2584_s3 + $0xac] ss:$16 sps:$4 sm:$0xff]  }
 0x50b   :  { %v1049_v20 = vadd.f32 %v1002_v17, %v2620_v19  ;;  %v1051_v22 = vadd.f32 %v1043_v18, %v2621_v21  ;;  %v1004_v23 = vpop.f32.mrb[34].mxu0  ;;  %v1045_v24 = vpop.f32.mrb[34].mxu1  ;;  %v2482_v12 = vld [vmem:[%s2584_s3 + $0xa0] ss:$16 sps:$4 sm:$0xff]   ;;  %v2623_v17 = vld [vmem:[#allocation16_spill] sm:$0xff] }
 0x50c   :  { %v1517_v26 = vmul.f32 -1.442695, %v1048_v13  ;;  %v1005_v27 = vpop.f32.mrb[35].mxu0  ;;  %v1046_v28 = vpop.f32.mrb[35].mxu1  ;;  %v2488_v13 = vld [vmem:[%s2584_s3 + $0xa8] ss:$16 sps:$4 sm:$0xff]  }
 0x50d   :  { %v1518_v29 = vmul.f32 -1.442695, %v1049_v20  ;;  %v1519_v30 = vmul.f32 -1.442695, %v1051_v22  ;;  %v2624_v19 = vld [vmem:[#allocation17_spill] sm:$0xff]  ;;  %v2625_v20 = vld [vmem:[#allocation18_spill] sm:$0xff] }
 0x50e   :  { %1653 = vpow2.f32 %v1517_v26 }
 0x50f   :  { %1655 = vpow2.f32 %v1518_v29 }
 0x510   :  { %1657 = vpow2.f32 %v1519_v30 }
 0x511   :  { %1659 = vtanh.f32 %v1050_v16  ;;  %v2622_v16 = vld [vmem:[#allocation15_spill] sm:$0xff] }
 0x518   :  { %v1654_v31 = vpop.eup %1653 }
 0x519   :  { %v1656_v44 = vpop.eup %1655  ;;  %v1055_v50 = vadd.f32 1.0, %v1654_v31 }
 0x51a   :  { %v1061_v52 = vadd.f32 1.0, %v1656_v44  ;;  %v1658_v55 = vpop.eup %1657 }
 0x51b   :  { %1661 = vrcp.f32 %v1055_v50  ;;  %v1660_v53 = vpop.eup %1659  ;;  %v1068_v47 = vadd.f32 1.0, %v1658_v55 }
 0x51c   :  { %1663 = vrcp.f32 %v1061_v52 }
 0x51d   :  { %1665 = vrcp.f32 %v1068_v47 }
 0x525   :  { %v1662_v2 = vpop.eup %1661 }
 0x526   :  { %v1664_v56 = vpop.eup %1663  ;;  %v1072_v57 = vmul.f32 %v1662_v2, %v1660_v53 }
 0x527   :  { %v1071_v58 = vmul.f32 %v1664_v56, %v2302_v45  ;;  %v1666_v60 = vpop.eup %1665  ;;  %v2440_v45 = vld [vmem:[%s2584_s3 + $0x68] ss:$16 sps:$4 sm:$0xff]  }
 0x529   :  { %v2354_v63 = vadd.f32 %v1072_v57, %v1071_v58  ;;  %v1742_v58 = vld [vmem:[%s2584_s3 + $0xcc] ss:$16 sps:$4 sm:$0xff]  }
 0x52b   :  { %1667 = vtanh.f32 %v2354_v63 }
 0x535   :  { %v1668_v62 = vpop.eup %1667 }
 0x536   :  { %v1075_v0 = vmul.f32 %v1668_v62, %v1666_v60  ;;  %v1744_v60 = vld [vmem:[%s2584_s3 + $0xc8] ss:$16 sps:$4 sm:$0xff]   ;;  %v1745_v62 = vld [vmem:[%s2584_s3 + $0xe4] ss:$16 sps:$4 sm:$0xff]  }
 0x538   :  { %v1083_v34 = vpack.c.bf16 %v1075_v0, %v1075_v0  ;;  %v1746_v0 = vld [vmem:[%s2584_s3 + $0xec] ss:$16 sps:$4 sm:$0xff]  }
 0x53a   :  { %1117 = vmatmul.mubr.bf16.vlgmr.msra.gmra.mrb[36].mxu0 %v1083_v34  ;;  %1158 = vmatmul.mubr.bf16.vlgmr.msra.gmra.mrb[36].mxu1 %v1083_v34  ;;  %v1747_v34 = vld [vmem:[%s2584_s3 + $0xe0] ss:$16 sps:$4 sm:$0xff]  }
 0x53b   :  { %1203 = vmatpush1.bf16.msra.mxu0 %v2360_v6  ;;  %1244 = vmatpush1.bf16.msra.mxu1 %v2366_v7 }
 0x53c   :  { %1204 = vmatprep.subr.bf16.mxu0 %v2372_v5  ;;  %1245 = vmatprep.subr.bf16.mxu1 %v2378_v25 }
 0x53d   :  { %1234 = vmatprep.mubr.bf16.mxu0 %v2612_v49  ;;  %1275 = vmatprep.mubr.bf16.mxu1 %v2612_v49 }
 0x53f   :  { %1205 = vmatpush1.bf16.msra.mxu0 %v2386_v40  ;;  %1246 = vmatpush1.bf16.msra.mxu1 %v2392_v1 }
 0x540   :  { %1206 = vmatprep.subr.bf16.mxu0 %v2398_v43  ;;  %1247 = vmatprep.subr.bf16.mxu1 %v2404_v61 }
 0x543   :  { %1207 = vmatpush1.bf16.msra.mxu0 %v2410_v14  ;;  %1248 = vmatpush1.bf16.msra.mxu1 %v2416_v46 }
 0x544   :  { %1208 = vmatprep.subr.bf16.mxu0 %v2422_v42  ;;  %1249 = vmatprep.subr.bf16.mxu1 %v2428_v48 }
 0x547   :  { %1209 = vmatpush1.bf16.msra.mxu0 %v2434_v59  ;;  %1250 = vmatpush1.bf16.msra.mxu1 %v2440_v45 }
 0x548   :  { %1210 = vmatprep.subr.bf16.mxu0 %v2446_v4  ;;  %1251 = vmatprep.subr.bf16.mxu1 %v2452_v3 }
 0x54b   :  { %1211 = vmatpush1.bf16.msra.mxu0 %v2458_v51  ;;  %1252 = vmatpush1.bf16.msra.mxu1 %v2464_v54 }
 0x54c   :  { %1212 = vmatprep.subr.bf16.mxu0 %v2470_v10  ;;  %1253 = vmatprep.subr.bf16.mxu1 %v2476_v11 }
 0x54f   :  { %1213 = vmatpush1.bf16.msra.mxu0 %v2482_v12  ;;  %1254 = vmatpush1.bf16.msra.mxu1 %v2488_v13 }
 0x550   :  { %1214 = vmatprep.subr.bf16.mxu0 %v1993_v32  ;;  %1255 = vmatprep.subr.bf16.mxu1 %v2000_v33 }
 0x553   :  { %1215 = vmatpush1.bf16.msra.mxu0 %v2009_v35  ;;  %1256 = vmatpush1.bf16.msra.mxu1 %v2016_v36 }
 0x554   :  { %1216 = vmatprep.subr.bf16.mxu0 %v2021_v37  ;;  %1257 = vmatprep.subr.bf16.mxu1 %v2027_v38 }
 0x557   :  { %1217 = vmatpush1.bf16.msra.mxu0 %v2035_v39  ;;  %1258 = vmatpush1.bf16.msra.mxu1 %v2046_v41 }
 0x558   :  { %1320 = vmatprep.subr.bf16.mxu0 %v2340_v8  ;;  %1361 = vmatprep.subr.bf16.mxu1 %v2346_v9 }
 0x60d   :  { %v1118_v15 = vpop.f32.mrb[36].mxu0  ;;  %v1159_v32 = vpop.f32.mrb[36].mxu1 }
 0x60e   :  { %v1166_v33 = vadd.f32 %v1118_v15, %v2622_v16  ;;  %v1168_v35 = vadd.f32 %v1159_v32, %v2623_v17  ;;  %v1120_v18 = vpop.f32.mrb[37].mxu0  ;;  %v1161_v36 = vpop.f32.mrb[37].mxu1 }
 0x60f   :  { %v1167_v37 = vadd.f32 %v1120_v18, %v2624_v19  ;;  %v1169_v38 = vadd.f32 %v1161_v36, %v2625_v20  ;;  %v1122_v21 = vpop.f32.mrb[38].mxu0  ;;  %v1163_v39 = vpop.f32.mrb[38].mxu1 }
 0x610   :  { %v1520_v22 = vmul.f32 -1.442695, %v1166_v33  ;;  %v1123_v41 = vpop.f32.mrb[39].mxu0  ;;  %v1164_v23 = vpop.f32.mrb[39].mxu1 }
 0x611   :  { %v1521_v8 = vmul.f32 -1.442695, %v1167_v37  ;;  %v1522_v9 = vmul.f32 -1.442695, %v1169_v38  ;;  %v2630_v23 = vld [vmem:[#allocation23_spill] sm:$0xff] }
 0x612   :  { %1669 = vpow2.f32 %v1520_v22 }
 0x613   :  { %1671 = vpow2.f32 %v1521_v8 }
 0x614   :  { %1673 = vpow2.f32 %v1522_v9  ;;  %v2631_v9 = vld [vmem:[#allocation24_spill] sm:$0xff] }
 0x615   :  { %1675 = vtanh.f32 %v1168_v35 }
 0x61c   :  { %v1670_v24 = vpop.eup %1669 }
 0x61d   :  { %v1672_v26 = vpop.eup %1671  ;;  %v1173_v27 = vadd.f32 1.0, %v1670_v24 }
 0x61e   :  { %v1179_v28 = vadd.f32 1.0, %v1672_v26  ;;  %v1674_v29 = vpop.eup %1673 }
 0x61f   :  { %1677 = vrcp.f32 %v1173_v27  ;;  %v1676_v30 = vpop.eup %1675  ;;  %v1186_v52 = vadd.f32 1.0, %v1674_v29 }
 0x620   :  { %1679 = vrcp.f32 %v1179_v28  ;;  %v2632_v28 = vld [vmem:[#allocation25_spill] sm:$0xff] }
 0x621   :  { %1681 = vrcp.f32 %v1186_v52 }
 0x629   :  { %v1678_v31 = vpop.eup %1677 }
 0x62a   :  { %v1680_v44 = vpop.eup %1679  ;;  %v1190_v50 = vmul.f32 %v1678_v31, %v1676_v30  ;;  %v2633_v30 = vld [vmem:[#allocation26_spill] sm:$0xff] }
 0x62b   :  { %v1189_v55 = vmul.f32 %v1680_v44, %v2354_v63  ;;  %v1682_v2 = vpop.eup %1681  ;;  %v1743_v63 = vld [vmem:[%s2584_s3 + $0xc0] ss:$16 sps:$4 sm:$0xff]  }
 0x62d   :  { %v2506_v53 = vadd.f32 %v1190_v50, %v1189_v55 }
 0x62f   :  { %1683 = vtanh.f32 %v2506_v53 }
 0x639   :  { %v1684_v56 = vpop.eup %1683 }
 0x63a   :  { %v1193_v57 = vmul.f32 %v1684_v56, %v1682_v2 }
 0x63c   :  { %v1201_v47 = vpack.c.bf16 %v1193_v57, %v1193_v57 }
 0x63e   :  { %1235 = vmatmul.mubr.bf16.vlgmr.msra.gmra.mrb[40].mxu0 %v1201_v47  ;;  %1276 = vmatmul.mubr.bf16.vlgmr.msra.gmra.mrb[40].mxu1 %v1201_v47 }
 0x63f   :  { %1321 = vmatpush1.bf16.msra.mxu0 %v2360_v6  ;;  %1362 = vmatpush1.bf16.msra.mxu1 %v2366_v7  ;;  %v1748_v6 = vld [vmem:[%s2584_s3 + $0xe8] ss:$16 sps:$4 sm:$0xff]  }
 0x640   :  { %1322 = vmatprep.subr.bf16.mxu0 %v2372_v5  ;;  %1363 = vmatprep.subr.bf16.mxu1 %v2378_v25  ;;  %v2626_v25 = vld [vmem:[#allocation19_spill] sm:$0xff] }
 0x641   :  { %1352 = vmatprep.mubr.bf16.mxu0 %v2612_v49  ;;  %1393 = vmatprep.mubr.bf16.mxu1 %v2612_v49  ;;  %v1741_v49 = vld [vmem:[%s2584_s3 + $0xc4] ss:$16 sps:$4 sm:$0xff]   ;;  %s1774_s3 = smov [#allocation3]  }
 0x642   :  { %s1440_s18 = sshll.u32 %s1774_s3, 4  ;;  %s1441_s18 = int_to_ptr.vmem [resolvable:$true] %s1440_s18 }
 0x643   :  { %1323 = vmatpush1.bf16.msra.mxu0 %v2386_v40  ;;  %1364 = vmatpush1.bf16.msra.mxu1 %v2392_v1  ;;  %v2627_v1 = vld [vmem:[#allocation20_spill] sm:$0xff]  ;;  %s1749_s19 = scalar_lea.vmem %s1441_s18, 128  ;;  %p1754_p1 = scmp.lt.s32.totalorder %s1441_s18, %s1441_s18 }
 0x644   :  { %1324 = vmatprep.subr.bf16.mxu0 %v2398_v43  ;;  %1365 = vmatprep.subr.bf16.mxu1 %v2404_v61  ;;  %p1750_p0 = scmp.ne.s32.totalorder %s1441_s18, %s1749_s19  ;;  %p1755_p2 = scmp.lt.s32.totalorder %s1749_s19, %s1749_s19 }
 0x646   :  { %p1756_p3 = por %p1755_p2, %p1754_p1 }
 0x647   :  { %1325 = vmatpush1.bf16.msra.mxu0 %v2410_v14  ;;  %1366 = vmatpush1.bf16.msra.mxu1 %v2416_v46  ;;  %v2628_v46 = vld [vmem:[#allocation21_spill] sm:$0xff] }
 0x648   :  { %1326 = vmatprep.subr.bf16.mxu0 %v2422_v42  ;;  %1367 = vmatprep.subr.bf16.mxu1 %v2428_v48  ;;  %v2629_v48 = vld [vmem:[#allocation22_spill] sm:$0xff]  ;;  %p1757_p4 = pnand %p1756_p3, %p1750_p0 }
 0x64b   :  { %1327 = vmatpush1.bf16.msra.mxu0 %v2434_v59  ;;  %1368 = vmatpush1.bf16.msra.mxu1 %v2440_v45 }
 0x64c   :  { %1328 = vmatprep.subr.bf16.mxu0 %v2446_v4  ;;  %1369 = vmatprep.subr.bf16.mxu1 %v2452_v3 }
 0x64f   :  { %1329 = vmatpush1.bf16.msra.mxu0 %v2458_v51  ;;  %1370 = vmatpush1.bf16.msra.mxu1 %v2464_v54 }
 0x650   :  { %1330 = vmatprep.subr.bf16.mxu0 %v2470_v10  ;;  %1371 = vmatprep.subr.bf16.mxu1 %v2476_v11 }
 0x653   :  { %1331 = vmatpush1.bf16.msra.mxu0 %v2482_v12  ;;  %1372 = vmatpush1.bf16.msra.mxu1 %v2488_v13 }
 0x654   :  { %1332 = vmatprep.subr.bf16.mxu0 %v1741_v49  ;;  %1373 = vmatprep.subr.bf16.mxu1 %v1742_v58 }
 0x657   :  { %1333 = vmatpush1.bf16.msra.mxu0 %v1743_v63  ;;  %1374 = vmatpush1.bf16.msra.mxu1 %v1744_v60 }
 0x658   :  { %1334 = vmatprep.subr.bf16.mxu0 %v1745_v62  ;;  %1375 = vmatprep.subr.bf16.mxu1 %v1746_v0 }
 0x65b   :  { %1335 = vmatpush1.bf16.msra.mxu0 %v1747_v34  ;;  %1376 = vmatpush1.bf16.msra.mxu1 %v1748_v6 }
 0x711   :  { %v1236_v7 = vpop.f32.mrb[40].mxu0  ;;  %v1277_v5 = vpop.f32.mrb[40].mxu1 }
 0x712   :  { %v1284_v40 = vadd.f32 %v1236_v7, %v2626_v25  ;;  %v1286_v43 = vadd.f32 %v1277_v5, %v2627_v1  ;;  %v1238_v61 = vpop.f32.mrb[41].mxu0  ;;  %v1279_v14 = vpop.f32.mrb[41].mxu1 }
 0x713   :  { %v1285_v42 = vadd.f32 %v1238_v61, %v2628_v46  ;;  %v1287_v59 = vadd.f32 %v1279_v14, %v2629_v48  ;;  %v1240_v45 = vpop.f32.mrb[42].mxu0  ;;  %v1281_v4 = vpop.f32.mrb[42].mxu1 }
 0x714   :  { %v1523_v3 = vmul.f32 -1.442695, %v1284_v40  ;;  %v1241_v51 = vpop.f32.mrb[43].mxu0  ;;  %v1282_v54 = vpop.f32.mrb[43].mxu1 }
 0x715   :  { %v1524_v10 = vmul.f32 -1.442695, %v1285_v42  ;;  %v1525_v11 = vmul.f32 -1.442695, %v1287_v59 }
 0x716   :  { %1685 = vpow2.f32 %v1523_v3 }
 0x717   :  { %1687 = vpow2.f32 %v1524_v10 }
 0x718   :  { %1689 = vpow2.f32 %v1525_v11 }
 0x719   :  { %1691 = vtanh.f32 %v1286_v43 }
 0x720   :  { %v1686_v12 = vpop.eup %1685 }
 0x721   :  { %v1688_v13 = vpop.eup %1687  ;;  %v1291_v15 = vadd.f32 1.0, %v1686_v12 }
 0x722   :  { %v1297_v32 = vadd.f32 1.0, %v1688_v13  ;;  %v1690_v16 = vpop.eup %1689 }
 0x723   :  { %1693 = vrcp.f32 %v1291_v15  ;;  %v1692_v33 = vpop.eup %1691  ;;  %v1304_v36 = vadd.f32 1.0, %v1690_v16 }
 0x724   :  { %1695 = vrcp.f32 %v1297_v32 }
 0x725   :  { %1697 = vrcp.f32 %v1304_v36 }
 0x72d   :  { %v1694_v17 = vpop.eup %1693 }
 0x72e   :  { %v1696_v35 = vpop.eup %1695  ;;  %v1308_v18 = vmul.f32 %v1694_v17, %v1692_v33 }
 0x72f   :  { %v1307_v19 = vmul.f32 %v1696_v35, %v2506_v53  ;;  %v1698_v20 = vpop.eup %1697 }
 0x731   :  { %v1309_v37 = vadd.f32 %v1308_v18, %v1307_v19 }
 0x733   :  { %1699 = vtanh.f32 %v1309_v37 }
 0x73d   :  { %v1700_v38 = vpop.eup %1699 }
 0x73e   :  { %v1311_v21 = vmul.f32 %v1700_v38, %v1698_v20 }
 0x740   :  { %v1319_v39 = vpack.c.bf16 %v1311_v21, %v1311_v21 }
 0x742   :  { %1353 = vmatmul.mubr.bf16.vlgmr.msra.gmra.mrb[44].mxu0 %v1319_v39  ;;  %1394 = vmatmul.mubr.bf16.vlgmr.msra.gmra.mrb[44].mxu1 %v1319_v39 }
 0x815   :  { %v1354_v22 = vpop.f32.mrb[44].mxu0  ;;  %v1395_v41 = vpop.f32.mrb[44].mxu1 }
 0x816   :  { %v1402_v8 = vadd.f32 %v1354_v22, %v2630_v23  ;;  %v1404_v24 = vadd.f32 %v1395_v41, %v2631_v9  ;;  %v1356_v26 = vpop.f32.mrb[45].mxu0  ;;  %v1397_v27 = vpop.f32.mrb[45].mxu1 }
 0x817   :  { %v1403_v29 = vadd.f32 %v1356_v26, %v2632_v28  ;;  %v1405_v31 = vadd.f32 %v1397_v27, %v2633_v30  ;;  %v1358_v44 = vpop.f32.mrb[46].mxu0  ;;  %v1399_v50 = vpop.f32.mrb[46].mxu1 }
 0x818   :  { %v1526_v52 = vmul.f32 -1.442695, %v1402_v8  ;;  %v1359_v55 = vpop.f32.mrb[47].mxu0  ;;  %v1400_v53 = vpop.f32.mrb[47].mxu1 }
 0x819   :  { %v1527_v2 = vmul.f32 -1.442695, %v1403_v29  ;;  %v1528_v56 = vmul.f32 -1.442695, %v1405_v31 }
 0x81a   :  { %1701 = vpow2.f32 %v1526_v52 }
 0x81b   :  { %1703 = vpow2.f32 %v1527_v2 }
 0x81c   :  { %1705 = vpow2.f32 %v1528_v56 }
 0x81d   :  { %1707 = vtanh.f32 %v1404_v24 }
 0x824   :  { %v1702_v57 = vpop.eup %1701 }
 0x825   :  { %v1704_v47 = vpop.eup %1703  ;;  %v1409_v49 = vadd.f32 1.0, %v1702_v57 }
 0x826   :  { %v1415_v58 = vadd.f32 1.0, %v1704_v47  ;;  %v1706_v63 = vpop.eup %1705 }
 0x827   :  { %1709 = vrcp.f32 %v1409_v49  ;;  %v1708_v60 = vpop.eup %1707  ;;  %v1422_v34 = vadd.f32 1.0, %v1706_v63 }
 0x828   :  { %1711 = vrcp.f32 %v1415_v58 }
 0x829   :  { %1713 = vrcp.f32 %v1422_v34 }
 0x831   :  { %v1710_v62 = vpop.eup %1709 }
 0x832   :  { %v1712_v0 = vpop.eup %1711  ;;  %v1426_v6 = vmul.f32 %v1710_v62, %v1708_v60 }
 0x833   :  { %v1425_v7 = vmul.f32 %v1712_v0, %v1309_v37 }
 0x835   :  { %v1427_v5 = vadd.f32 %v1426_v6, %v1425_v7 }
 0x837   :  { %1715 = vtanh.f32 %v1427_v5  ;;  %1431 = vst [vmem:[#allocation3] sm:$0xff] %v1427_v5 }
 0x838   :  { %1760 = shalt.err (!%p1757_p4)
}
 0x839   :  { %s1761_s22 = scalar_lea.hbm %s2588_s7, 128 }
 0x83a   :  { %p1762_p5 = scmp.ne.s32.totalorder %s2588_s7, %s1761_s22  ;;  %p1765_p6 = scmp.lt.u32.totalorder %s1761_s22, %s2588_s7 }
 0x83c   :  { %p1767_p7 = pnand %p1765_p6, %p1762_p5 }
 0x83e   :  { %1770 = shalt.err (!%p1767_p7)
}
 0x83f   :  { %1443 = dma.vmem_to_hbm [thread:$0]  %s1441_s18, 128, %s2588_s7, [#allocation4]   ;;  %v1714_v25 = vpop.eup %1713 }
 0x841   :  { %v1716_v40 = vpop.eup %1715 }
 0x842   :  { %v1429_v1 = vmul.f32 %v1716_v40, %v1714_v25 }
 0x844   :  { %1430 = vst [vmem:[%s2587_s6] sm:$0xff] %v1429_v1 }
 0x845   :  { %1771 = dma.done.wait [#allocation4], 128  }
 0x846   :  { %1772 = vsyncadd [#allocation4], 4294967168 }
 0x847   :  { %1449 = vsyncpa [#allocation4], 1 }

</bundles_post_ra>
